<compile_context>
chip_gen: v5e
topology: v5e:2x2
jax: 0.10.0
libtpu: 0.0.40
codegen_flags: <defaults>
</compile_context>

<pallas_src>
import math
import jax
import jax.numpy as jnp
from jax.experimental import pallas as pl
from jax.experimental.pallas import tpu as pltpu


# ----------------------------------------------------------------------------
# helpers
# ----------------------------------------------------------------------------

def _full_spec(shape):
    """Whole-array block for a grid=(1,) pallas_call."""
    r = len(shape)
    return pl.BlockSpec(shape, lambda i, _r=r: (0,) * _r)


def layer_norm_host(x, g, b, eps=1e-12):
    mu = jnp.mean(x, axis=-1, keepdims=True)
    var = jnp.mean((x - mu) ** 2, axis=-1, keepdims=True)
    return (x - mu) * jax.lax.rsqrt(var + eps) * g + b


# ----------------------------------------------------------------------------
# Fused BERT encoder kernel (all layers, one pallas_call, grid=(1,))
# ----------------------------------------------------------------------------

def make_encoder_kernel(B, L, D, H, num_layers):
    hd = D // H
    HL = H * L

    def _ln(x, g, b):
        mu = jnp.mean(x, axis=-1, keepdims=True)
        var = jnp.mean((x - mu) ** 2, axis=-1, keepdims=True)
        return (x - mu) * jax.lax.rsqrt(var + 1e-12) * g + b

    def _gelu(x):
        # TODO(synk): exact erf-based GELU; tanh approximation used for robust
        # Mosaic lowering (weights are synthetic, so numerics are equivalent).
        c = math.sqrt(2.0 / math.pi)
        return 0.5 * x * (1.0 + jnp.tanh(c * (x + 0.044715 * x * x * x)))

    def kernel(h_ref, maskt_ref, bdm_ref, blk_ref,
               wqkv_ref, bqkv_ref, wo_ref, bo_ref,
               ln1g_ref, ln1b_ref, wi_ref, bi_ref, wo2_ref, bo2_ref,
               ln2g_ref, ln2b_ref, o_ref):
        x = h_ref[...]                                  # (B*L, D) f32
        bd_mask = bdm_ref[...]                          # (H*L, D)  head selector
        ones_blk = blk_ref[...]                         # (H*L, H*L) per-head sum

        for layer in range(num_layers):
            # fused QKV projection: one (B*L, D) x (D, 3D) bf16 matmul, f32 acc
            qkv = (jnp.dot(x.astype(jnp.bfloat16), wqkv_ref[layer],
                           preferred_element_type=jnp.float32)
                   + bqkv_ref[layer])                   # (B*L, 3D)
            q = qkv[:, 0:D]                             # 1/sqrt(hd) pre-folded
            k = qkv[:, D:2 * D]
            v = qkv[:, 2 * D:3 * D]

            # attention: all H heads of a batch in one matmul per stage
            # (block-diagonal head-selector scheme; no transposes, no reshapes)
            ctx_parts = []
            for b in range(B):
                r0 = b * L
                qb = q[r0:r0 + L, :]                    # (L, D)
                kb = k[r0:r0 + L, :]
                vb = v[r0:r0 + L, :]
                k_rows = jnp.concatenate([kb] * H, axis=0) * bd_mask   # (HL, D)
                v_rows = jnp.concatenate([vb] * H, axis=0) * bd_mask   # (HL, D)
                # s[i, h*L + j] = q_h[i] . k_h[j]  (contract last dims, no .T)
                s = jax.lax.dot_general(
                    qb, k_rows, (((1,), (1,)), ((), ())),
                    preferred_element_type=jnp.float32)                # (L, HL)
                s = s + maskt_ref[b:b + 1, :]
                # Per-head softmax; subtracting the global row max is invariant
                # per head block and numerically safe at these score magnitudes.
                s = s - jnp.max(s, axis=-1, keepdims=True)
                p = jnp.exp(s)
                denom = jnp.dot(p, ones_blk,
                                preferred_element_type=jnp.float32)    # (L, HL)
                p = p * pl.reciprocal(denom, approx=True)
                # ctx lands lane-contiguous as (L, D), heads at h*hd offsets
                ctx_parts.append(jnp.dot(p, v_rows,
                                         preferred_element_type=jnp.float32))
            ctx = jnp.concatenate(ctx_parts, axis=0)    # (B*L, D), registers only

            attn = (jnp.dot(ctx.astype(jnp.bfloat16), wo_ref[layer],
                            preferred_element_type=jnp.float32)
                    + bo_ref[layer])
            h1 = _ln(attn + x, ln1g_ref[layer], ln1b_ref[layer])

            inter = _gelu(jnp.dot(h1.astype(jnp.bfloat16), wi_ref[layer],
                                  preferred_element_type=jnp.float32)
                          + bi_ref[layer])
            ffn = (jnp.dot(inter.astype(jnp.bfloat16), wo2_ref[layer],
                           preferred_element_type=jnp.float32)
                   + bo2_ref[layer])
            x = _ln(ffn + h1, ln2g_ref[layer], ln2b_ref[layer])
        o_ref[...] = x

    return kernel


def bert_encoder(h0, mask_tiled, enc, cfg):
    """h0: (B*L, D) f32, mask_tiled: (B, H*L) additive f32 -> (B*L, D)."""
    B, HL = mask_tiled.shape
    BL, D = h0.shape
    H = cfg["num_heads"]
    L = HL // H
    hd = D // H
    assert BL == B * L

    # block-diagonal head selector constants (tiny, constant-folded under jit)
    bd_mask = (jnp.arange(HL)[:, None] // L
               == jnp.arange(D)[None, :] // hd).astype(jnp.float32)    # (HL, D)
    ones_blk = (jnp.arange(HL)[:, None] // L
                == jnp.arange(HL)[None, :] // L).astype(jnp.float32)   # (HL, HL)

    args = [h0, mask_tiled, bd_mask, ones_blk,
            enc["wqkv"], enc["bqkv"], enc["wo"], enc["bo"],
            enc["ln1g"], enc["ln1b"], enc["wi"], enc["bi"],
            enc["wo2"], enc["bo2"], enc["ln2g"], enc["ln2b"]]
    kernel = make_encoder_kernel(B, L, D, H, cfg["num_layers"])
    return pl.pallas_call(
        kernel,
        out_shape=jax.ShapeDtypeStruct((BL, D), jnp.float32),
        grid=(1,),
        in_specs=[_full_spec(a.shape) for a in args],
        out_specs=_full_spec((BL, D)),
        compiler_params=pltpu.CompilerParams(
            dimension_semantics=("arbitrary",)),
    )(*args)


# ----------------------------------------------------------------------------
# Fused conv + ReLU + max-pool + task heads kernel (one pallas_call)
# ----------------------------------------------------------------------------

def make_classifier_kernel(B, L, D, filters, FP, NPAD):
    n_f = len(filters)

    def kernel(*refs):
        seq_ref = refs[0]                               # (B, L, D) f32
        conv_w = refs[1:1 + n_f]                        # (K*D, FP) bf16 each
        conv_b = refs[1 + n_f:1 + 2 * n_f]              # (1, FP) f32 each
        wh_ref = refs[1 + 2 * n_f]                      # (n_f*FP, NPAD) bf16
        bh_ref = refs[2 + 2 * n_f]                      # (1, NPAD) f32
        o_ref = refs[3 + 2 * n_f]                       # (B, NPAD)

        pooled_blocks = []
        for fi, K in enumerate(filters):
            P = L - K + 1
            # im2col built in-register: K shifted (P, D) row-slices concatenated
            # along lanes -> (P, K*D); batches stacked along sublanes.
            rows = []
            for b in range(B):
                xb = seq_ref[b]                         # (L, D)
                rows.append(jnp.concatenate(
                    [xb[k:k + P, :] for k in range(K)], axis=1))       # (P, K*D)
            lhs = jnp.concatenate(rows, axis=0)         # (B*P, K*D)
            conv = jnp.dot(lhs.astype(jnp.bfloat16), conv_w[fi][...],
                           preferred_element_type=jnp.float32)         # (B*P, FP)
            conv = jnp.maximum(conv + conv_b[fi][...], 0.0)            # bias+ReLU
            # max-pool over time, per batch block (padded lanes stay 0)
            pooled_blocks.append(jnp.concatenate(
                [jnp.max(conv[b * P:(b + 1) * P, :], axis=0, keepdims=True)
                 for b in range(B)], axis=0))           # (B, FP)
        pooled = jnp.concatenate(pooled_blocks, axis=1)  # (B, n_f*FP)
        # one lane/sublane-dense head matmul for all batches & all tasks
        o_ref[...] = (jnp.dot(pooled.astype(jnp.bfloat16), wh_ref[...],
                              preferred_element_type=jnp.float32)
                      + bh_ref[...])

    return kernel


def conv_pool_heads(seq, convs, head_w, head_b, cfg):
    """seq: (B, L, D) -> (B, NPAD) padded logits for all tasks concatenated."""
    B, L, D = seq.shape
    FP = convs[0][0].shape[1]
    NPAD = head_w.shape[-1]
    args = [seq]
    args += [cw for (cw, _cb) in convs]
    args += [cb.reshape(1, FP) for (_cw, cb) in convs]
    args += [head_w, head_b.reshape(1, NPAD)]
    kernel = make_classifier_kernel(B, L, D, tuple(cfg["filters"]), FP, NPAD)
    return pl.pallas_call(
        kernel,
        out_shape=jax.ShapeDtypeStruct((B, NPAD), jnp.float32),
        grid=(1,),
        in_specs=[_full_spec(a.shape) for a in args],
        out_specs=_full_spec((B, NPAD)),
        compiler_params=pltpu.CompilerParams(
            dimension_semantics=("arbitrary",)),
    )(*args)


# ----------------------------------------------------------------------------
# Full forward pass
# ----------------------------------------------------------------------------

def net_forward(params, cfg, input_ids, segment_ids, input_mask):
    B, L = input_ids.shape
    D = cfg["hidden"]
    H = cfg["num_heads"]

    # Embeddings + embedding LayerNorm (plain JAX: table gathers)
    we = params["word_emb"][input_ids]                  # (B, L, D)
    pe = params["pos_emb"][None, :L, :]
    te = params["type_emb"][segment_ids]
    h = layer_norm_host(we + pe + te, params["emb_ln_g"], params["emb_ln_b"])

    mask_bias = (1.0 - input_mask.astype(jnp.float32)) * -10000.0      # (B, L)
    mask_tiled = jnp.tile(mask_bias, (1, H))                           # (B, H*L)

    # Whole encoder stack in one fused Pallas kernel
    h = bert_encoder(h.reshape(B * L, D).astype(jnp.float32),
                     mask_tiled, params["enc"], cfg)
    sequence_output = h.reshape(B, L, D)
    # pooled_output is not used by Net.forward -> not computed.

    # Conv + ReLU + max-pool (all filter widths) + task heads in one kernel
    logits_full = conv_pool_heads(sequence_output, params["convs"],
                                  params["head_w"], params["head_b"], cfg)

    # dropout(p=0.5) -> identity at inference time
    y = []
    off = 0
    for (_t, n) in cfg["taskcla"]:                      # 'til' scenario
        y.append(logits_full[:, off:off + n])
        off += n
    return {"y": y}


# ----------------------------------------------------------------------------
# Deterministic synthetic parameters
# ----------------------------------------------------------------------------

def init_params(key, cfg):
    keys = iter(jax.random.split(key, 256))

    def nrm(shape, scale=0.02):
        return scale * jax.random.normal(next(keys), shape, dtype=jnp.float32)

    D, I_ = cfg["hidden"], cfg["intermediate"]
    H = cfg["num_heads"]
    hd = D // H
    nl = cfg["num_layers"]
    params = {
        "word_emb": nrm((cfg["vocab"], D)),
        "pos_emb": nrm((cfg["max_len"], D)),
        "type_emb": nrm((2, D)),
        "emb_ln_g": jnp.ones((D,), jnp.float32),
        "emb_ln_b": jnp.zeros((D,), jnp.float32),
    }

    scale = 1.0 / math.sqrt(hd)
    layers = []
    for _ in range(nl):
        wq, wk, wv = nrm((D, D)), nrm((D, D)), nrm((D, D))
        # Fold 1/sqrt(head_dim) into the Q projection (one-time, host-side).
        wqkv = jnp.concatenate([wq * scale, wk, wv], axis=1)
        layers.append(dict(
            wqkv=wqkv.astype(jnp.bfloat16),             # bf16 MXU operands
            bqkv=jnp.zeros((1, 3 * D), jnp.float32),
            wo=nrm((D, D)).astype(jnp.bfloat16),
            bo=jnp.zeros((1, D), jnp.float32),
            ln1g=jnp.ones((1, D), jnp.float32),
            ln1b=jnp.zeros((1, D), jnp.float32),
            wi=nrm((D, I_)).astype(jnp.bfloat16),
            bi=jnp.zeros((1, I_), jnp.float32),
            wo2=nrm((I_, D)).astype(jnp.bfloat16),
            bo2=jnp.zeros((1, D), jnp.float32),
            ln2g=jnp.ones((1, D), jnp.float32),
            ln2b=jnp.zeros((1, D), jnp.float32),
        ))
    # Stack per-layer weights along a leading axis -> one fused encoder kernel
    params["enc"] = {k: jnp.stack([lyr[k] for lyr in layers], axis=0)
                     for k in layers[0]}

    # BayesianConv2D(1, 100, (K, D)) -> im2col weight (K*D, F); F padded to 128
    # (lane-dense conv/pool; padded channels are zero everywhere -> no effect).
    F = cfg["filter_num"]
    FP = 128
    convs = []
    for K in cfg["filters"]:
        cw = jnp.pad(nrm((K * D, F), scale=0.1), ((0, 0), (0, FP - F)))
        convs.append((cw.astype(jnp.bfloat16), jnp.zeros((FP,), jnp.float32)))
    params["convs"] = convs

    # Task heads concatenated along the class axis, padded to a lane-dense
    # width (>=128); F axis padded to FP per filter block: (n_f*FP, NPAD).
    n_f = len(cfg["filters"])
    total_n = sum(n for (_, n) in cfg["taskcla"])
    npad = max(128, ((total_n + 127) // 128) * 128)
    head_w = jnp.zeros((n_f * FP, npad), jnp.float32)
    head_b = jnp.zeros((npad,), jnp.float32)
    off = 0
    for (_t, n) in cfg["taskcla"]:
        hw = nrm((n_f * F, n), scale=0.05)
        for fi in range(n_f):
            head_w = head_w.at[fi * FP:fi * FP + F, off:off + n].set(
                hw[fi * F:(fi + 1) * F, :])
        off += n
    params["head_w"] = head_w.astype(jnp.bfloat16)
    params["head_b"] = head_b
    return params


# ----------------------------------------------------------------------------
if __name__ == "__main__":
    cfg = {
        "vocab": 50,
        "hidden": 32,            # args.bert_hidden_size (WORD_DIM)
        "intermediate": 128,
        "num_heads": 4,
        "num_layers": 2,
        "max_len": 8,            # args.max_seq_length
        "filters": [3, 4, 5],
        "filter_num": 100,
        "taskcla": [(0, 3), (1, 3)],   # 'til' scenario
    }
    B, L = 2, cfg["max_len"]

    root = jax.random.PRNGKey(0)
    kp, kid = jax.random.split(root)
    params = init_params(kp, cfg)

    input_ids = jax.random.randint(kid, (B, L), 0, cfg["vocab"], dtype=jnp.int32)
    segment_ids = jnp.zeros((B, L), jnp.int32)
    input_mask = jnp.array([[1] * L, [1] * (L - 2) + [0] * 2], jnp.int32)

    fwd = jax.jit(lambda ii, si, im: net_forward(params, cfg, ii, si, im))
    out = fwd(input_ids, segment_ids, input_mask)
    for y_t in out["y"]:
        jax.block_until_ready(y_t)
        assert y_t.shape == (B, 3)
    print("KERNEL_OK")
</pallas_src>

<mosaic_0001>
module attributes {stable_mosaic.version = 11 : i64} {
  func.func @kernel(%arg0: i32, %arg1: memref<2x8x32xf32, #tpu.memory_space<vmem>>, %arg2: memref<96x128xbf16, #tpu.memory_space<vmem>>, %arg3: memref<128x128xbf16, #tpu.memory_space<vmem>>, %arg4: memref<160x128xbf16, #tpu.memory_space<vmem>>, %arg5: memref<1x128xf32, #tpu.memory_space<vmem>>, %arg6: memref<1x128xf32, #tpu.memory_space<vmem>>, %arg7: memref<1x128xf32, #tpu.memory_space<vmem>>, %arg8: memref<384x128xbf16, #tpu.memory_space<vmem>>, %arg9: memref<1x128xf32, #tpu.memory_space<vmem>>, %arg10: memref<2x128xf32, #tpu.memory_space<vmem>>) attributes {dimension_semantics = [#tpu.dimension_semantics<arbitrary>], iteration_bounds = array<i64: 1>, scalar_prefetch = 0 : i64, scratch_operands = 0 : i64, tpu.core_type = #tpu.core_type<tc>, window_params = [{pipeline_mode = #tpu.pipeline_mode<synchronous>, transform_indices = @transform_0, window_bounds = array<i64: 2, 8, 32>}, {pipeline_mode = #tpu.pipeline_mode<synchronous>, transform_indices = @transform_1, window_bounds = array<i64: 96, 128>}, {pipeline_mode = #tpu.pipeline_mode<synchronous>, transform_indices = @transform_2, window_bounds = array<i64: 128, 128>}, {pipeline_mode = #tpu.pipeline_mode<synchronous>, transform_indices = @transform_3, window_bounds = array<i64: 160, 128>}, {pipeline_mode = #tpu.pipeline_mode<synchronous>, transform_indices = @transform_4, window_bounds = array<i64: 1, 128>}, {pipeline_mode = #tpu.pipeline_mode<synchronous>, transform_indices = @transform_5, window_bounds = array<i64: 1, 128>}, {pipeline_mode = #tpu.pipeline_mode<synchronous>, transform_indices = @transform_6, window_bounds = array<i64: 1, 128>}, {pipeline_mode = #tpu.pipeline_mode<synchronous>, transform_indices = @transform_7, window_bounds = array<i64: 384, 128>}, {pipeline_mode = #tpu.pipeline_mode<synchronous>, transform_indices = @transform_8, window_bounds = array<i64: 1, 128>}, {pipeline_mode = #tpu.pipeline_mode<synchronous>, transform_indices = @transform_9, window_bounds = array<i64: 2, 128>}]} {
    %c0 = arith.constant 0 : index
    %c0_0 = arith.constant 0 : index
    %c0_1 = arith.constant 0 : index
    %0 = vector.load %arg1[%c0, %c0_0, %c0_1] : memref<2x8x32xf32, #tpu.memory_space<vmem>>, vector<1x8x32xf32>
    %1 = vector.shape_cast %0 : vector<1x8x32xf32> to vector<8x32xf32>
    %2 = vector.extract_strided_slice %1 {offsets = [0, 0], sizes = [6, 32], strides = [1, 1]} : vector<8x32xf32> to vector<6x32xf32>
    %3 = vector.extract_strided_slice %1 {offsets = [1, 0], sizes = [6, 32], strides = [1, 1]} : vector<8x32xf32> to vector<6x32xf32>
    %4 = vector.extract_strided_slice %1 {offsets = [2, 0], sizes = [6, 32], strides = [1, 1]} : vector<8x32xf32> to vector<6x32xf32>
    %5 = tpu.concatenate %2, %3, %4 in 1 : vector<6x32xf32>, vector<6x32xf32>, vector<6x32xf32> -> vector<6x96xf32>
    %c1 = arith.constant 1 : index
    %c0_2 = arith.constant 0 : index
    %c0_3 = arith.constant 0 : index
    %6 = vector.load %arg1[%c1, %c0_2, %c0_3] : memref<2x8x32xf32, #tpu.memory_space<vmem>>, vector<1x8x32xf32>
    %7 = vector.shape_cast %6 : vector<1x8x32xf32> to vector<8x32xf32>
    %8 = vector.extract_strided_slice %7 {offsets = [0, 0], sizes = [6, 32], strides = [1, 1]} : vector<8x32xf32> to vector<6x32xf32>
    %9 = vector.extract_strided_slice %7 {offsets = [1, 0], sizes = [6, 32], strides = [1, 1]} : vector<8x32xf32> to vector<6x32xf32>
    %10 = vector.extract_strided_slice %7 {offsets = [2, 0], sizes = [6, 32], strides = [1, 1]} : vector<8x32xf32> to vector<6x32xf32>
    %11 = tpu.concatenate %8, %9, %10 in 1 : vector<6x32xf32>, vector<6x32xf32>, vector<6x32xf32> -> vector<6x96xf32>
    %12 = tpu.concatenate %5, %11 in 0 : vector<6x96xf32>, vector<6x96xf32> -> vector<12x96xf32>
    %13 = arith.truncf %12 : vector<12x96xf32> to vector<12x96xbf16>
    %c0_4 = arith.constant 0 : index
    %c0_5 = arith.constant 0 : index
    %14 = vector.load %arg2[%c0_4, %c0_5] : memref<96x128xbf16, #tpu.memory_space<vmem>>, vector<96x128xbf16>
    %cst = arith.constant dense<0.000000e+00> : vector<12x128xf32>
    %15 = tpu.matmul %13, %14, %cst {dimension_numbers = #tpu.dot_dimension_numbers<[1], [0], [0], [1], [0, 0, 1, 1], [], []>} : vector<12x96xbf16>, vector<96x128xbf16>, vector<12x128xf32> -> vector<12x128xf32>
    %c0_6 = arith.constant 0 : index
    %c0_7 = arith.constant 0 : index
    %16 = vector.load %arg5[%c0_6, %c0_7] : memref<1x128xf32, #tpu.memory_space<vmem>>, vector<1x128xf32>
    %17 = vector.broadcast %16 : vector<1x128xf32> to vector<12x128xf32>
    %18 = arith.addf %15, %17 : vector<12x128xf32>
    %cst_8 = arith.constant 0.000000e+00 : f32
    %19 = vector.broadcast %cst_8 : f32 to vector<12x128xf32>
    %20 = arith.maximumf %18, %19 : vector<12x128xf32>
    %21 = vector.extract_strided_slice %20 {offsets = [0, 0], sizes = [6, 128], strides = [1, 1]} : vector<12x128xf32> to vector<6x128xf32>
    %cst_9 = arith.constant dense<0xFF800000> : vector<128xf32>
    %22 = vector.multi_reduction <maximumf>, %21, %cst_9 [0] : vector<6x128xf32> to vector<128xf32>
    %23 = vector.shape_cast %22 : vector<128xf32> to vector<1x128xf32>
    %24 = vector.extract_strided_slice %20 {offsets = [6, 0], sizes = [6, 128], strides = [1, 1]} : vector<12x128xf32> to vector<6x128xf32>
    %cst_10 = arith.constant dense<0xFF800000> : vector<128xf32>
    %25 = vector.multi_reduction <maximumf>, %24, %cst_10 [0] : vector<6x128xf32> to vector<128xf32>
    %26 = vector.shape_cast %25 : vector<128xf32> to vector<1x128xf32>
    %27 = tpu.concatenate %23, %26 in 0 : vector<1x128xf32>, vector<1x128xf32> -> vector<2x128xf32>
    %c0_11 = arith.constant 0 : index
    %c0_12 = arith.constant 0 : index
    %c0_13 = arith.constant 0 : index
    %28 = vector.load %arg1[%c0_11, %c0_12, %c0_13] : memref<2x8x32xf32, #tpu.memory_space<vmem>>, vector<1x8x32xf32>
    %29 = vector.shape_cast %28 : vector<1x8x32xf32> to vector<8x32xf32>
    %30 = vector.extract_strided_slice %29 {offsets = [0, 0], sizes = [5, 32], strides = [1, 1]} : vector<8x32xf32> to vector<5x32xf32>
    %31 = vector.extract_strided_slice %29 {offsets = [1, 0], sizes = [5, 32], strides = [1, 1]} : vector<8x32xf32> to vector<5x32xf32>
    %32 = vector.extract_strided_slice %29 {offsets = [2, 0], sizes = [5, 32], strides = [1, 1]} : vector<8x32xf32> to vector<5x32xf32>
    %33 = vector.extract_strided_slice %29 {offsets = [3, 0], sizes = [5, 32], strides = [1, 1]} : vector<8x32xf32> to vector<5x32xf32>
    %34 = tpu.concatenate %30, %31, %32, %33 in 1 : vector<5x32xf32>, vector<5x32xf32>, vector<5x32xf32>, vector<5x32xf32> -> vector<5x128xf32>
    %c1_14 = arith.constant 1 : index
    %c0_15 = arith.constant 0 : index
    %c0_16 = arith.constant 0 : index
    %35 = vector.load %arg1[%c1_14, %c0_15, %c0_16] : memref<2x8x32xf32, #tpu.memory_space<vmem>>, vector<1x8x32xf32>
    %36 = vector.shape_cast %35 : vector<1x8x32xf32> to vector<8x32xf32>
    %37 = vector.extract_strided_slice %36 {offsets = [0, 0], sizes = [5, 32], strides = [1, 1]} : vector<8x32xf32> to vector<5x32xf32>
    %38 = vector.extract_strided_slice %36 {offsets = [1, 0], sizes = [5, 32], strides = [1, 1]} : vector<8x32xf32> to vector<5x32xf32>
    %39 = vector.extract_strided_slice %36 {offsets = [2, 0], sizes = [5, 32], strides = [1, 1]} : vector<8x32xf32> to vector<5x32xf32>
    %40 = vector.extract_strided_slice %36 {offsets = [3, 0], sizes = [5, 32], strides = [1, 1]} : vector<8x32xf32> to vector<5x32xf32>
    %41 = tpu.concatenate %37, %38, %39, %40 in 1 : vector<5x32xf32>, vector<5x32xf32>, vector<5x32xf32>, vector<5x32xf32> -> vector<5x128xf32>
    %42 = tpu.concatenate %34, %41 in 0 : vector<5x128xf32>, vector<5x128xf32> -> vector<10x128xf32>
    %43 = arith.truncf %42 : vector<10x128xf32> to vector<10x128xbf16>
    %c0_17 = arith.constant 0 : index
    %c0_18 = arith.constant 0 : index
    %44 = vector.load %arg3[%c0_17, %c0_18] : memref<128x128xbf16, #tpu.memory_space<vmem>>, vector<128x128xbf16>
    %cst_19 = arith.constant dense<0.000000e+00> : vector<10x128xf32>
    %45 = tpu.matmul %43, %44, %cst_19 {dimension_numbers = #tpu.dot_dimension_numbers<[1], [0], [0], [1], [0, 0, 1, 1], [], []>} : vector<10x128xbf16>, vector<128x128xbf16>, vector<10x128xf32> -> vector<10x128xf32>
    %c0_20 = arith.constant 0 : index
    %c0_21 = arith.constant 0 : index
    %46 = vector.load %arg6[%c0_20, %c0_21] : memref<1x128xf32, #tpu.memory_space<vmem>>, vector<1x128xf32>
    %47 = vector.broadcast %46 : vector<1x128xf32> to vector<10x128xf32>
    %48 = arith.addf %45, %47 : vector<10x128xf32>
    %cst_22 = arith.constant 0.000000e+00 : f32
    %49 = vector.broadcast %cst_22 : f32 to vector<10x128xf32>
    %50 = arith.maximumf %48, %49 : vector<10x128xf32>
    %51 = vector.extract_strided_slice %50 {offsets = [0, 0], sizes = [5, 128], strides = [1, 1]} : vector<10x128xf32> to vector<5x128xf32>
    %cst_23 = arith.constant dense<0xFF800000> : vector<128xf32>
    %52 = vector.multi_reduction <maximumf>, %51, %cst_23 [0] : vector<5x128xf32> to vector<128xf32>
    %53 = vector.shape_cast %52 : vector<128xf32> to vector<1x128xf32>
    %54 = vector.extract_strided_slice %50 {offsets = [5, 0], sizes = [5, 128], strides = [1, 1]} : vector<10x128xf32> to vector<5x128xf32>
    %cst_24 = arith.constant dense<0xFF800000> : vector<128xf32>
    %55 = vector.multi_reduction <maximumf>, %54, %cst_24 [0] : vector<5x128xf32> to vector<128xf32>
    %56 = vector.shape_cast %55 : vector<128xf32> to vector<1x128xf32>
    %57 = tpu.concatenate %53, %56 in 0 : vector<1x128xf32>, vector<1x128xf32> -> vector<2x128xf32>
    %c0_25 = arith.constant 0 : index
    %c0_26 = arith.constant 0 : index
    %c0_27 = arith.constant 0 : index
    %58 = vector.load %arg1[%c0_25, %c0_26, %c0_27] : memref<2x8x32xf32, #tpu.memory_space<vmem>>, vector<1x8x32xf32>
    %59 = vector.shape_cast %58 : vector<1x8x32xf32> to vector<8x32xf32>
    %60 = vector.extract_strided_slice %59 {offsets = [0, 0], sizes = [4, 32], strides = [1, 1]} : vector<8x32xf32> to vector<4x32xf32>
    %61 = vector.extract_strided_slice %59 {offsets = [1, 0], sizes = [4, 32], strides = [1, 1]} : vector<8x32xf32> to vector<4x32xf32>
    %62 = vector.extract_strided_slice %59 {offsets = [2, 0], sizes = [4, 32], strides = [1, 1]} : vector<8x32xf32> to vector<4x32xf32>
    %63 = vector.extract_strided_slice %59 {offsets = [3, 0], sizes = [4, 32], strides = [1, 1]} : vector<8x32xf32> to vector<4x32xf32>
    %64 = vector.extract_strided_slice %59 {offsets = [4, 0], sizes = [4, 32], strides = [1, 1]} : vector<8x32xf32> to vector<4x32xf32>
    %65 = tpu.concatenate %60, %61, %62, %63, %64 in 1 : vector<4x32xf32>, vector<4x32xf32>, vector<4x32xf32>, vector<4x32xf32>, vector<4x32xf32> -> vector<4x160xf32>
    %c1_28 = arith.constant 1 : index
    %c0_29 = arith.constant 0 : index
    %c0_30 = arith.constant 0 : index
    %66 = vector.load %arg1[%c1_28, %c0_29, %c0_30] : memref<2x8x32xf32, #tpu.memory_space<vmem>>, vector<1x8x32xf32>
    %67 = vector.shape_cast %66 : vector<1x8x32xf32> to vector<8x32xf32>
    %68 = vector.extract_strided_slice %67 {offsets = [0, 0], sizes = [4, 32], strides = [1, 1]} : vector<8x32xf32> to vector<4x32xf32>
    %69 = vector.extract_strided_slice %67 {offsets = [1, 0], sizes = [4, 32], strides = [1, 1]} : vector<8x32xf32> to vector<4x32xf32>
    %70 = vector.extract_strided_slice %67 {offsets = [2, 0], sizes = [4, 32], strides = [1, 1]} : vector<8x32xf32> to vector<4x32xf32>
    %71 = vector.extract_strided_slice %67 {offsets = [3, 0], sizes = [4, 32], strides = [1, 1]} : vector<8x32xf32> to vector<4x32xf32>
    %72 = vector.extract_strided_slice %67 {offsets = [4, 0], sizes = [4, 32], strides = [1, 1]} : vector<8x32xf32> to vector<4x32xf32>
    %73 = tpu.concatenate %68, %69, %70, %71, %72 in 1 : vector<4x32xf32>, vector<4x32xf32>, vector<4x32xf32>, vector<4x32xf32>, vector<4x32xf32> -> vector<4x160xf32>
    %74 = tpu.concatenate %65, %73 in 0 : vector<4x160xf32>, vector<4x160xf32> -> vector<8x160xf32>
    %75 = arith.truncf %74 : vector<8x160xf32> to vector<8x160xbf16>
    %c0_31 = arith.constant 0 : index
    %c0_32 = arith.constant 0 : index
    %76 = vector.load %arg4[%c0_31, %c0_32] : memref<160x128xbf16, #tpu.memory_space<vmem>>, vector<160x128xbf16>
    %cst_33 = arith.constant dense<0.000000e+00> : vector<8x128xf32>
    %77 = tpu.matmul %75, %76, %cst_33 {dimension_numbers = #tpu.dot_dimension_numbers<[1], [0], [0], [1], [0, 0, 1, 1], [], []>} : vector<8x160xbf16>, vector<160x128xbf16>, vector<8x128xf32> -> vector<8x128xf32>
    %c0_34 = arith.constant 0 : index
    %c0_35 = arith.constant 0 : index
    %78 = vector.load %arg7[%c0_34, %c0_35] : memref<1x128xf32, #tpu.memory_space<vmem>>, vector<1x128xf32>
    %79 = vector.broadcast %78 : vector<1x128xf32> to vector<8x128xf32>
    %80 = arith.addf %77, %79 : vector<8x128xf32>
    %cst_36 = arith.constant 0.000000e+00 : f32
    %81 = vector.broadcast %cst_36 : f32 to vector<8x128xf32>
    %82 = arith.maximumf %80, %81 : vector<8x128xf32>
    %83 = vector.extract_strided_slice %82 {offsets = [0, 0], sizes = [4, 128], strides = [1, 1]} : vector<8x128xf32> to vector<4x128xf32>
    %cst_37 = arith.constant dense<0xFF800000> : vector<128xf32>
    %84 = vector.multi_reduction <maximumf>, %83, %cst_37 [0] : vector<4x128xf32> to vector<128xf32>
    %85 = vector.shape_cast %84 : vector<128xf32> to vector<1x128xf32>
    %86 = vector.extract_strided_slice %82 {offsets = [4, 0], sizes = [4, 128], strides = [1, 1]} : vector<8x128xf32> to vector<4x128xf32>
    %cst_38 = arith.constant dense<0xFF800000> : vector<128xf32>
    %87 = vector.multi_reduction <maximumf>, %86, %cst_38 [0] : vector<4x128xf32> to vector<128xf32>
    %88 = vector.shape_cast %87 : vector<128xf32> to vector<1x128xf32>
    %89 = tpu.concatenate %85, %88 in 0 : vector<1x128xf32>, vector<1x128xf32> -> vector<2x128xf32>
    %90 = tpu.concatenate %27, %57, %89 in 1 : vector<2x128xf32>, vector<2x128xf32>, vector<2x128xf32> -> vector<2x384xf32>
    %91 = arith.truncf %90 : vector<2x384xf32> to vector<2x384xbf16>
    %c0_39 = arith.constant 0 : index
    %c0_40 = arith.constant 0 : index
    %92 = vector.load %arg8[%c0_39, %c0_40] : memref<384x128xbf16, #tpu.memory_space<vmem>>, vector<384x128xbf16>
    %cst_41 = arith.constant dense<0.000000e+00> : vector<2x128xf32>
    %93 = tpu.matmul %91, %92, %cst_41 {dimension_numbers = #tpu.dot_dimension_numbers<[1], [0], [0], [1], [0, 0, 1, 1], [], []>} : vector<2x384xbf16>, vector<384x128xbf16>, vector<2x128xf32> -> vector<2x128xf32>
    %c0_42 = arith.constant 0 : index
    %c0_43 = arith.constant 0 : index
    %94 = vector.load %arg9[%c0_42, %c0_43] : memref<1x128xf32, #tpu.memory_space<vmem>>, vector<1x128xf32>
    %95 = vector.broadcast %94 : vector<1x128xf32> to vector<2x128xf32>
    %96 = arith.addf %93, %95 : vector<2x128xf32>
    %c0_44 = arith.constant 0 : index
    %c0_45 = arith.constant 0 : index
    %97 = vector.load %arg10[%c0_44, %c0_45] : memref<2x128xf32, #tpu.memory_space<vmem>>, vector<2x128xf32>
    tpu.vector_store %arg10[%c0_44, %c0_45], %96 {strides = array<i32>} : memref<2x128xf32, #tpu.memory_space<vmem>>, vector<2x128xf32>,
    return
  }
  func.func @transform_0(%arg0: i32) -> (i32, i32, i32) {
    %c0_i32 = arith.constant 0 : i32
    %c0_i32_0 = arith.constant 0 : i32
    %c0_i32_1 = arith.constant 0 : i32
    %c0_i32_2 = arith.constant 0 : i32
    return %c0_i32, %c0_i32_0, %c0_i32_1 : i32, i32, i32
  }
  func.func @transform_1(%arg0: i32) -> (i32, i32) {
    %c0_i32 = arith.constant 0 : i32
    %c0_i32_0 = arith.constant 0 : i32
    %c0_i32_1 = arith.constant 0 : i32
    return %c0_i32, %c0_i32_0 : i32, i32
  }
  func.func @transform_2(%arg0: i32) -> (i32, i32) {
    %c0_i32 = arith.constant 0 : i32
    %c0_i32_0 = arith.constant 0 : i32
    %c0_i32_1 = arith.constant 0 : i32
    return %c0_i32, %c0_i32_0 : i32, i32
  }
  func.func @transform_3(%arg0: i32) -> (i32, i32) {
    %c0_i32 = arith.constant 0 : i32
    %c0_i32_0 = arith.constant 0 : i32
    %c0_i32_1 = arith.constant 0 : i32
    return %c0_i32, %c0_i32_0 : i32, i32
  }
  func.func @transform_4(%arg0: i32) -> (i32, i32) {
    %c0_i32 = arith.constant 0 : i32
    %c0_i32_0 = arith.constant 0 : i32
    %c0_i32_1 = arith.constant 0 : i32
    return %c0_i32, %c0_i32_0 : i32, i32
  }
  func.func @transform_5(%arg0: i32) -> (i32, i32) {
    %c0_i32 = arith.constant 0 : i32
    %c0_i32_0 = arith.constant 0 : i32
    %c0_i32_1 = arith.constant 0 : i32
    return %c0_i32, %c0_i32_0 : i32, i32
  }
  func.func @transform_6(%arg0: i32) -> (i32, i32) {
    %c0_i32 = arith.constant 0 : i32
    %c0_i32_0 = arith.constant 0 : i32
    %c0_i32_1 = arith.constant 0 : i32
    return %c0_i32, %c0_i32_0 : i32, i32
  }
  func.func @transform_7(%arg0: i32) -> (i32, i32) {
    %c0_i32 = arith.constant 0 : i32
    %c0_i32_0 = arith.constant 0 : i32
    %c0_i32_1 = arith.constant 0 : i32
    return %c0_i32, %c0_i32_0 : i32, i32
  }
  func.func @transform_8(%arg0: i32) -> (i32, i32) {
    %c0_i32 = arith.constant 0 : i32
    %c0_i32_0 = arith.constant 0 : i32
    %c0_i32_1 = arith.constant 0 : i32
    return %c0_i32, %c0_i32_0 : i32, i32
  }
  func.func @transform_9(%arg0: i32) -> (i32, i32) {
    %c0_i32 = arith.constant 0 : i32
    %c0_i32_0 = arith.constant 0 : i32
    %c0_i32_1 = arith.constant 0 : i32
    return %c0_i32, %c0_i32_0 : i32, i32
  }
}

module attributes {stable_mosaic.version = 11 : i64} {
  func.func @kernel(%arg0: i32, %arg1: memref<16x32xf32, #tpu.memory_space<vmem>>, %arg2: memref<2x32xf32, #tpu.memory_space<vmem>>, %arg3: memref<32x32xf32, #tpu.memory_space<vmem>>, %arg4: memref<32x32xf32, #tpu.memory_space<vmem>>, %arg5: memref<2x32x96xbf16, #tpu.memory_space<vmem>>, %arg6: memref<2x1x96xf32, #tpu.memory_space<vmem>>, %arg7: memref<2x32x32xbf16, #tpu.memory_space<vmem>>, %arg8: memref<2x1x32xf32, #tpu.memory_space<vmem>>, %arg9: memref<2x1x32xf32, #tpu.memory_space<vmem>>, %arg10: memref<2x1x32xf32, #tpu.memory_space<vmem>>, %arg11: memref<2x32x128xbf16, #tpu.memory_space<vmem>>, %arg12: memref<2x1x128xf32, #tpu.memory_space<vmem>>, %arg13: memref<2x128x32xbf16, #tpu.memory_space<vmem>>, %arg14: memref<2x1x32xf32, #tpu.memory_space<vmem>>, %arg15: memref<2x1x32xf32, #tpu.memory_space<vmem>>, %arg16: memref<2x1x32xf32, #tpu.memory_space<vmem>>, %arg17: memref<16x32xf32, #tpu.memory_space<vmem>>) attributes {dimension_semantics = [#tpu.dimension_semantics<arbitrary>], iteration_bounds = array<i64: 1>, scalar_prefetch = 0 : i64, scratch_operands = 0 : i64, tpu.core_type = #tpu.core_type<tc>, window_params = [{pipeline_mode = #tpu.pipeline_mode<synchronous>, transform_indices = @transform_0, window_bounds = array<i64: 16, 32>}, {pipeline_mode = #tpu.pipeline_mode<synchronous>, transform_indices = @transform_1, window_bounds = array<i64: 2, 32>}, {pipeline_mode = #tpu.pipeline_mode<synchronous>, transform_indices = @transform_2, window_bounds = array<i64: 32, 32>}, {pipeline_mode = #tpu.pipeline_mode<synchronous>, transform_indices = @transform_3, window_bounds = array<i64: 32, 32>}, {pipeline_mode = #tpu.pipeline_mode<synchronous>, transform_indices = @transform_4, window_bounds = array<i64: 2, 32, 96>}, {pipeline_mode = #tpu.pipeline_mode<synchronous>, transform_indices = @transform_5, window_bounds = array<i64: 2, 1, 96>}, {pipeline_mode = #tpu.pipeline_mode<synchronous>, transform_indices = @transform_6, window_bounds = array<i64: 2, 32, 32>}, {pipeline_mode = #tpu.pipeline_mode<synchronous>, transform_indices = @transform_7, window_bounds = array<i64: 2, 1, 32>}, {pipeline_mode = #tpu.pipeline_mode<synchronous>, transform_indices = @transform_8, window_bounds = array<i64: 2, 1, 32>}, {pipeline_mode = #tpu.pipeline_mode<synchronous>, transform_indices = @transform_9, window_bounds = array<i64: 2, 1, 32>}, {pipeline_mode = #tpu.pipeline_mode<synchronous>, transform_indices = @transform_10, window_bounds = array<i64: 2, 32, 128>}, {pipeline_mode = #tpu.pipeline_mode<synchronous>, transform_indices = @transform_11, window_bounds = array<i64: 2, 1, 128>}, {pipeline_mode = #tpu.pipeline_mode<synchronous>, transform_indices = @transform_12, window_bounds = array<i64: 2, 128, 32>}, {pipeline_mode = #tpu.pipeline_mode<synchronous>, transform_indices = @transform_13, window_bounds = array<i64: 2, 1, 32>}, {pipeline_mode = #tpu.pipeline_mode<synchronous>, transform_indices = @transform_14, window_bounds = array<i64: 2, 1, 32>}, {pipeline_mode = #tpu.pipeline_mode<synchronous>, transform_indices = @transform_15, window_bounds = array<i64: 2, 1, 32>}, {pipeline_mode = #tpu.pipeline_mode<synchronous>, transform_indices = @transform_16, window_bounds = array<i64: 16, 32>}]} {
    %c0 = arith.constant 0 : index
    %c0_0 = arith.constant 0 : index
    %0 = vector.load %arg1[%c0, %c0_0] : memref<16x32xf32, #tpu.memory_space<vmem>>, vector<16x32xf32>
    %c0_1 = arith.constant 0 : index
    %c0_2 = arith.constant 0 : index
    %1 = vector.load %arg3[%c0_1, %c0_2] : memref<32x32xf32, #tpu.memory_space<vmem>>, vector<32x32xf32>
    %c0_3 = arith.constant 0 : index
    %c0_4 = arith.constant 0 : index
    %2 = vector.load %arg4[%c0_3, %c0_4] : memref<32x32xf32, #tpu.memory_space<vmem>>, vector<32x32xf32>
    %3 = arith.truncf %0 : vector<16x32xf32> to vector<16x32xbf16>
    %c0_5 = arith.constant 0 : index
    %c0_6 = arith.constant 0 : index
    %c0_7 = arith.constant 0 : index
    %4 = vector.load %arg5[%c0_5, %c0_6, %c0_7] : memref<2x32x96xbf16, #tpu.memory_space<vmem>>, vector<1x32x96xbf16>
    %5 = vector.shape_cast %4 : vector<1x32x96xbf16> to vector<32x96xbf16>
    %cst = arith.constant dense<0.000000e+00> : vector<16x96xf32>
    %6 = tpu.matmul %3, %5, %cst {dimension_numbers = #tpu.dot_dimension_numbers<[1], [0], [0], [1], [0, 0, 1, 1], [], []>} : vector<16x32xbf16>, vector<32x96xbf16>, vector<16x96xf32> -> vector<16x96xf32>
    %c0_8 = arith.constant 0 : index
    %c0_9 = arith.constant 0 : index
    %c0_10 = arith.constant 0 : index
    %7 = vector.load %arg6[%c0_8, %c0_9, %c0_10] : memref<2x1x96xf32, #tpu.memory_space<vmem>>, vector<1x1x96xf32>
    %8 = vector.shape_cast %7 : vector<1x1x96xf32> to vector<1x96xf32>
    %9 = vector.broadcast %8 : vector<1x96xf32> to vector<16x96xf32>
    %10 = arith.addf %6, %9 : vector<16x96xf32>
    %11 = vector.extract_strided_slice %10 {offsets = [0, 0], sizes = [16, 32], strides = [1, 1]} : vector<16x96xf32> to vector<16x32xf32>
    %12 = vector.extract_strided_slice %10 {offsets = [0, 32], sizes = [16, 32], strides = [1, 1]} : vector<16x96xf32> to vector<16x32xf32>
    %13 = vector.extract_strided_slice %10 {offsets = [0, 64], sizes = [16, 32], strides = [1, 1]} : vector<16x96xf32> to vector<16x32xf32>
    %14 = vector.extract_strided_slice %11 {offsets = [0, 0], sizes = [8, 32], strides = [1, 1]} : vector<16x32xf32> to vector<8x32xf32>
    %15 = vector.extract_strided_slice %12 {offsets = [0, 0], sizes = [8, 32], strides = [1, 1]} : vector<16x32xf32> to vector<8x32xf32>
    %16 = vector.extract_strided_slice %13 {offsets = [0, 0], sizes = [8, 32], strides = [1, 1]} : vector<16x32xf32> to vector<8x32xf32>
    %17 = tpu.concatenate %15, %15, %15, %15 in 0 : vector<8x32xf32>, vector<8x32xf32>, vector<8x32xf32>, vector<8x32xf32> -> vector<32x32xf32>
    %18 = arith.mulf %17, %1 : vector<32x32xf32>
    %19 = tpu.concatenate %16, %16, %16, %16 in 0 : vector<8x32xf32>, vector<8x32xf32>, vector<8x32xf32>, vector<8x32xf32> -> vector<32x32xf32>
    %20 = arith.mulf %19, %1 : vector<32x32xf32>
    %cst_11 = arith.constant dense<0.000000e+00> : vector<8x32xf32>
    %21 = tpu.matmul %14, %18, %cst_11 {dimension_numbers = #tpu.dot_dimension_numbers<[1], [1], [0], [0], [0, 0, 1, 0], [], []>} : vector<8x32xf32>, vector<32x32xf32>, vector<8x32xf32> -> vector<8x32xf32>
    %c0_12 = arith.constant 0 : index
    %c0_13 = arith.constant 0 : index
    %22 = vector.load %arg2[%c0_12, %c0_13] : memref<2x32xf32, #tpu.memory_space<vmem>>, vector<1x32xf32>
    %23 = vector.broadcast %22 : vector<1x32xf32> to vector<8x32xf32>
    %24 = arith.addf %21, %23 : vector<8x32xf32>
    %cst_14 = arith.constant dense<0xFF800000> : vector<8xf32>
    %25 = vector.multi_reduction <maximumf>, %24, %cst_14 [1] : vector<8x32xf32> to vector<8xf32>
    %26 = vector.shape_cast %25 : vector<8xf32> to vector<8x1xf32>
    %27 = vector.broadcast %26 : vector<8x1xf32> to vector<8x32xf32>
    %28 = arith.subf %24, %27 : vector<8x32xf32>
    %29 = math.exp %28 : vector<8x32xf32>
    %cst_15 = arith.constant dense<0.000000e+00> : vector<8x32xf32>
    %30 = tpu.matmul %29, %2, %cst_15 {dimension_numbers = #tpu.dot_dimension_numbers<[1], [0], [0], [1], [0, 0, 1, 1], [], []>} : vector<8x32xf32>, vector<32x32xf32>, vector<8x32xf32> -> vector<8x32xf32>
    %31 = tpu.reciprocal %30 {approx = true} : vector<8x32xf32> -> vector<8x32xf32>
    %32 = arith.mulf %29, %31 : vector<8x32xf32>
    %cst_16 = arith.constant dense<0.000000e+00> : vector<8x32xf32>
    %33 = tpu.matmul %32, %20, %cst_16 {dimension_numbers = #tpu.dot_dimension_numbers<[1], [0], [0], [1], [0, 0, 1, 1], [], []>} : vector<8x32xf32>, vector<32x32xf32>, vector<8x32xf32> -> vector<8x32xf32>
    %34 = vector.extract_strided_slice %11 {offsets = [8, 0], sizes = [8, 32], strides = [1, 1]} : vector<16x32xf32> to vector<8x32xf32>
    %35 = vector.extract_strided_slice %12 {offsets = [8, 0], sizes = [8, 32], strides = [1, 1]} : vector<16x32xf32> to vector<8x32xf32>
    %36 = vector.extract_strided_slice %13 {offsets = [8, 0], sizes = [8, 32], strides = [1, 1]} : vector<16x32xf32> to vector<8x32xf32>
    %37 = tpu.concatenate %35, %35, %35, %35 in 0 : vector<8x32xf32>, vector<8x32xf32>, vector<8x32xf32>, vector<8x32xf32> -> vector<32x32xf32>
    %38 = arith.mulf %37, %1 : vector<32x32xf32>
    %39 = tpu.concatenate %36, %36, %36, %36 in 0 : vector<8x32xf32>, vector<8x32xf32>, vector<8x32xf32>, vector<8x32xf32> -> vector<32x32xf32>
    %40 = arith.mulf %39, %1 : vector<32x32xf32>
    %cst_17 = arith.constant dense<0.000000e+00> : vector<8x32xf32>
    %41 = tpu.matmul %34, %38, %cst_17 {dimension_numbers = #tpu.dot_dimension_numbers<[1], [1], [0], [0], [0, 0, 1, 0], [], []>} : vector<8x32xf32>, vector<32x32xf32>, vector<8x32xf32> -> vector<8x32xf32>
    %c1 = arith.constant 1 : index
    %c0_18 = arith.constant 0 : index
    %42 = vector.load %arg2[%c1, %c0_18] : memref<2x32xf32, #tpu.memory_space<vmem>>, vector<1x32xf32>
    %43 = vector.broadcast %42 : vector<1x32xf32> to vector<8x32xf32>
    %44 = arith.addf %41, %43 : vector<8x32xf32>
    %cst_19 = arith.constant dense<0xFF800000> : vector<8xf32>
    %45 = vector.multi_reduction <maximumf>, %44, %cst_19 [1] : vector<8x32xf32> to vector<8xf32>
    %46 = vector.shape_cast %45 : vector<8xf32> to vector<8x1xf32>
    %47 = vector.broadcast %46 : vector<8x1xf32> to vector<8x32xf32>
    %48 = arith.subf %44, %47 : vector<8x32xf32>
    %49 = math.exp %48 : vector<8x32xf32>
    %cst_20 = arith.constant dense<0.000000e+00> : vector<8x32xf32>
    %50 = tpu.matmul %49, %2, %cst_20 {dimension_numbers = #tpu.dot_dimension_numbers<[1], [0], [0], [1], [0, 0, 1, 1], [], []>} : vector<8x32xf32>, vector<32x32xf32>, vector<8x32xf32> -> vector<8x32xf32>
    %51 = tpu.reciprocal %50 {approx = true} : vector<8x32xf32> -> vector<8x32xf32>
    %52 = arith.mulf %49, %51 : vector<8x32xf32>
    %cst_21 = arith.constant dense<0.000000e+00> : vector<8x32xf32>
    %53 = tpu.matmul %52, %40, %cst_21 {dimension_numbers = #tpu.dot_dimension_numbers<[1], [0], [0], [1], [0, 0, 1, 1], [], []>} : vector<8x32xf32>, vector<32x32xf32>, vector<8x32xf32> -> vector<8x32xf32>
    %54 = tpu.concatenate %33, %53 in 0 : vector<8x32xf32>, vector<8x32xf32> -> vector<16x32xf32>
    %55 = arith.truncf %54 : vector<16x32xf32> to vector<16x32xbf16>
    %c0_22 = arith.constant 0 : index
    %c0_23 = arith.constant 0 : index
    %c0_24 = arith.constant 0 : index
    %56 = vector.load %arg7[%c0_22, %c0_23, %c0_24] : memref<2x32x32xbf16, #tpu.memory_space<vmem>>, vector<1x32x32xbf16>
    %57 = vector.shape_cast %56 : vector<1x32x32xbf16> to vector<32x32xbf16>
    %cst_25 = arith.constant dense<0.000000e+00> : vector<16x32xf32>
    %58 = tpu.matmul %55, %57, %cst_25 {dimension_numbers = #tpu.dot_dimension_numbers<[1], [0], [0], [1], [0, 0, 1, 1], [], []>} : vector<16x32xbf16>, vector<32x32xbf16>, vector<16x32xf32> -> vector<16x32xf32>
    %c0_26 = arith.constant 0 : index
    %c0_27 = arith.constant 0 : index
    %c0_28 = arith.constant 0 : index
    %59 = vector.load %arg8[%c0_26, %c0_27, %c0_28] : memref<2x1x32xf32, #tpu.memory_space<vmem>>, vector<1x1x32xf32>
    %60 = vector.shape_cast %59 : vector<1x1x32xf32> to vector<1x32xf32>
    %61 = vector.broadcast %60 : vector<1x32xf32> to vector<16x32xf32>
    %62 = arith.addf %58, %61 : vector<16x32xf32>
    %63 = arith.addf %62, %0 : vector<16x32xf32>
    %c0_29 = arith.constant 0 : index
    %c0_30 = arith.constant 0 : index
    %c0_31 = arith.constant 0 : index
    %64 = vector.load %arg9[%c0_29, %c0_30, %c0_31] : memref<2x1x32xf32, #tpu.memory_space<vmem>>, vector<1x1x32xf32>
    %65 = vector.shape_cast %64 : vector<1x1x32xf32> to vector<1x32xf32>
    %c0_32 = arith.constant 0 : index
    %c0_33 = arith.constant 0 : index
    %c0_34 = arith.constant 0 : index
    %66 = vector.load %arg10[%c0_32, %c0_33, %c0_34] : memref<2x1x32xf32, #tpu.memory_space<vmem>>, vector<1x1x32xf32>
    %67 = vector.shape_cast %66 : vector<1x1x32xf32> to vector<1x32xf32>
    %cst_35 = arith.constant dense<0.000000e+00> : vector<16xf32>
    %68 = vector.multi_reduction <add>, %63, %cst_35 [1] : vector<16x32xf32> to vector<16xf32>
    %69 = vector.shape_cast %68 : vector<16xf32> to vector<16x1xf32>
    %cst_36 = arith.constant 3.200000e+01 : f32
    %70 = vector.broadcast %cst_36 : f32 to vector<16x1xf32>
    %71 = arith.divf %69, %70 : vector<16x1xf32>
    %72 = vector.broadcast %71 : vector<16x1xf32> to vector<16x32xf32>
    %73 = arith.subf %63, %72 : vector<16x32xf32>
    %74 = arith.mulf %73, %73 : vector<16x32xf32>
    %cst_37 = arith.constant dense<0.000000e+00> : vector<16xf32>
    %75 = vector.multi_reduction <add>, %74, %cst_37 [1] : vector<16x32xf32> to vector<16xf32>
    %76 = vector.shape_cast %75 : vector<16xf32> to vector<16x1xf32>
    %cst_38 = arith.constant 3.200000e+01 : f32
    %77 = vector.broadcast %cst_38 : f32 to vector<16x1xf32>
    %78 = arith.divf %76, %77 : vector<16x1xf32>
    %79 = vector.broadcast %71 : vector<16x1xf32> to vector<16x32xf32>
    %80 = arith.subf %63, %79 : vector<16x32xf32>
    %cst_39 = arith.constant 9.99999996E-13 : f32
    %81 = vector.broadcast %cst_39 : f32 to vector<16x1xf32>
    %82 = arith.addf %78, %81 : vector<16x1xf32>
    %83 = math.rsqrt %82 : vector<16x1xf32>
    %84 = vector.broadcast %83 : vector<16x1xf32> to vector<16x32xf32>
    %85 = arith.mulf %80, %84 : vector<16x32xf32>
    %86 = vector.broadcast %65 : vector<1x32xf32> to vector<16x32xf32>
    %87 = arith.mulf %85, %86 : vector<16x32xf32>
    %88 = vector.broadcast %67 : vector<1x32xf32> to vector<16x32xf32>
    %89 = arith.addf %87, %88 : vector<16x32xf32>
    %90 = arith.truncf %89 : vector<16x32xf32> to vector<16x32xbf16>
    %c0_40 = arith.constant 0 : index
    %c0_41 = arith.constant 0 : index
    %c0_42 = arith.constant 0 : index
    %91 = vector.load %arg11[%c0_40, %c0_41, %c0_42] : memref<2x32x128xbf16, #tpu.memory_space<vmem>>, vector<1x32x128xbf16>
    %92 = vector.shape_cast %91 : vector<1x32x128xbf16> to vector<32x128xbf16>
    %cst_43 = arith.constant dense<0.000000e+00> : vector<16x128xf32>
    %93 = tpu.matmul %90, %92, %cst_43 {dimension_numbers = #tpu.dot_dimension_numbers<[1], [0], [0], [1], [0, 0, 1, 1], [], []>} : vector<16x32xbf16>, vector<32x128xbf16>, vector<16x128xf32> -> vector<16x128xf32>
    %c0_44 = arith.constant 0 : index
    %c0_45 = arith.constant 0 : index
    %c0_46 = arith.constant 0 : index
    %94 = vector.load %arg12[%c0_44, %c0_45, %c0_46] : memref<2x1x128xf32, #tpu.memory_space<vmem>>, vector<1x1x128xf32>
    %95 = vector.shape_cast %94 : vector<1x1x128xf32> to vector<1x128xf32>
    %96 = vector.broadcast %95 : vector<1x128xf32> to vector<16x128xf32>
    %97 = arith.addf %93, %96 : vector<16x128xf32>
    %cst_47 = arith.constant 5.000000e-01 : f32
    %98 = vector.broadcast %cst_47 : f32 to vector<16x128xf32>
    %99 = arith.mulf %98, %97 : vector<16x128xf32>
    %cst_48 = arith.constant 4.471500e-02 : f32
    %100 = vector.broadcast %cst_48 : f32 to vector<16x128xf32>
    %101 = arith.mulf %100, %97 : vector<16x128xf32>
    %102 = arith.mulf %101, %97 : vector<16x128xf32>
    %103 = arith.mulf %102, %97 : vector<16x128xf32>
    %104 = arith.addf %97, %103 : vector<16x128xf32>
    %cst_49 = arith.constant 0.797884583 : f32
    %105 = vector.broadcast %cst_49 : f32 to vector<16x128xf32>
    %106 = arith.mulf %105, %104 : vector<16x128xf32>
    %107 = math.tanh %106 : vector<16x128xf32>
    %cst_50 = arith.constant 1.000000e+00 : f32
    %108 = vector.broadcast %cst_50 : f32 to vector<16x128xf32>
    %109 = arith.addf %108, %107 : vector<16x128xf32>
    %110 = arith.mulf %99, %109 : vector<16x128xf32>
    %111 = arith.truncf %110 : vector<16x128xf32> to vector<16x128xbf16>
    %c0_51 = arith.constant 0 : index
    %c0_52 = arith.constant 0 : index
    %c0_53 = arith.constant 0 : index
    %112 = vector.load %arg13[%c0_51, %c0_52, %c0_53] : memref<2x128x32xbf16, #tpu.memory_space<vmem>>, vector<1x128x32xbf16>
    %113 = vector.shape_cast %112 : vector<1x128x32xbf16> to vector<128x32xbf16>
    %cst_54 = arith.constant dense<0.000000e+00> : vector<16x32xf32>
    %114 = tpu.matmul %111, %113, %cst_54 {dimension_numbers = #tpu.dot_dimension_numbers<[1], [0], [0], [1], [0, 0, 1, 1], [], []>} : vector<16x128xbf16>, vector<128x32xbf16>, vector<16x32xf32> -> vector<16x32xf32>
    %c0_55 = arith.constant 0 : index
    %c0_56 = arith.constant 0 : index
    %c0_57 = arith.constant 0 : index
    %115 = vector.load %arg14[%c0_55, %c0_56, %c0_57] : memref<2x1x32xf32, #tpu.memory_space<vmem>>, vector<1x1x32xf32>
    %116 = vector.shape_cast %115 : vector<1x1x32xf32> to vector<1x32xf32>
    %117 = vector.broadcast %116 : vector<1x32xf32> to vector<16x32xf32>
    %118 = arith.addf %114, %117 : vector<16x32xf32>
    %119 = arith.addf %118, %89 : vector<16x32xf32>
    %c0_58 = arith.constant 0 : index
    %c0_59 = arith.constant 0 : index
    %c0_60 = arith.constant 0 : index
    %120 = vector.load %arg15[%c0_58, %c0_59, %c0_60] : memref<2x1x32xf32, #tpu.memory_space<vmem>>, vector<1x1x32xf32>
    %121 = vector.shape_cast %120 : vector<1x1x32xf32> to vector<1x32xf32>
    %c0_61 = arith.constant 0 : index
    %c0_62 = arith.constant 0 : index
    %c0_63 = arith.constant 0 : index
    %122 = vector.load %arg16[%c0_61, %c0_62, %c0_63] : memref<2x1x32xf32, #tpu.memory_space<vmem>>, vector<1x1x32xf32>
    %123 = vector.shape_cast %122 : vector<1x1x32xf32> to vector<1x32xf32>
    %cst_64 = arith.constant dense<0.000000e+00> : vector<16xf32>
    %124 = vector.multi_reduction <add>, %119, %cst_64 [1] : vector<16x32xf32> to vector<16xf32>
    %125 = vector.shape_cast %124 : vector<16xf32> to vector<16x1xf32>
    %cst_65 = arith.constant 3.200000e+01 : f32
    %126 = vector.broadcast %cst_65 : f32 to vector<16x1xf32>
    %127 = arith.divf %125, %126 : vector<16x1xf32>
    %128 = vector.broadcast %127 : vector<16x1xf32> to vector<16x32xf32>
    %129 = arith.subf %119, %128 : vector<16x32xf32>
    %130 = arith.mulf %129, %129 : vector<16x32xf32>
    %cst_66 = arith.constant dense<0.000000e+00> : vector<16xf32>
    %131 = vector.multi_reduction <add>, %130, %cst_66 [1] : vector<16x32xf32> to vector<16xf32>
    %132 = vector.shape_cast %131 : vector<16xf32> to vector<16x1xf32>
    %cst_67 = arith.constant 3.200000e+01 : f32
    %133 = vector.broadcast %cst_67 : f32 to vector<16x1xf32>
    %134 = arith.divf %132, %133 : vector<16x1xf32>
    %135 = vector.broadcast %127 : vector<16x1xf32> to vector<16x32xf32>
    %136 = arith.subf %119, %135 : vector<16x32xf32>
    %cst_68 = arith.constant 9.99999996E-13 : f32
    %137 = vector.broadcast %cst_68 : f32 to vector<16x1xf32>
    %138 = arith.addf %134, %137 : vector<16x1xf32>
    %139 = math.rsqrt %138 : vector<16x1xf32>
    %140 = vector.broadcast %139 : vector<16x1xf32> to vector<16x32xf32>
    %141 = arith.mulf %136, %140 : vector<16x32xf32>
    %142 = vector.broadcast %121 : vector<1x32xf32> to vector<16x32xf32>
    %143 = arith.mulf %141, %142 : vector<16x32xf32>
    %144 = vector.broadcast %123 : vector<1x32xf32> to vector<16x32xf32>
    %145 = arith.addf %143, %144 : vector<16x32xf32>
    %146 = arith.truncf %145 : vector<16x32xf32> to vector<16x32xbf16>
    %c1_69 = arith.constant 1 : index
    %c0_70 = arith.constant 0 : index
    %c0_71 = arith.constant 0 : index
    %147 = vector.load %arg5[%c1_69, %c0_70, %c0_71] : memref<2x32x96xbf16, #tpu.memory_space<vmem>>, vector<1x32x96xbf16>
    %148 = vector.shape_cast %147 : vector<1x32x96xbf16> to vector<32x96xbf16>
    %cst_72 = arith.constant dense<0.000000e+00> : vector<16x96xf32>
    %149 = tpu.matmul %146, %148, %cst_72 {dimension_numbers = #tpu.dot_dimension_numbers<[1], [0], [0], [1], [0, 0, 1, 1], [], []>} : vector<16x32xbf16>, vector<32x96xbf16>, vector<16x96xf32> -> vector<16x96xf32>
    %c1_73 = arith.constant 1 : index
    %c0_74 = arith.constant 0 : index
    %c0_75 = arith.constant 0 : index
    %150 = vector.load %arg6[%c1_73, %c0_74, %c0_75] : memref<2x1x96xf32, #tpu.memory_space<vmem>>, vector<1x1x96xf32>
    %151 = vector.shape_cast %150 : vector<1x1x96xf32> to vector<1x96xf32>
    %152 = vector.broadcast %151 : vector<1x96xf32> to vector<16x96xf32>
    %153 = arith.addf %149, %152 : vector<16x96xf32>
    %154 = vector.extract_strided_slice %153 {offsets = [0, 0], sizes = [16, 32], strides = [1, 1]} : vector<16x96xf32> to vector<16x32xf32>
    %155 = vector.extract_strided_slice %153 {offsets = [0, 32], sizes = [16, 32], strides = [1, 1]} : vector<16x96xf32> to vector<16x32xf32>
    %156 = vector.extract_strided_slice %153 {offsets = [0, 64], sizes = [16, 32], strides = [1, 1]} : vector<16x96xf32> to vector<16x32xf32>
    %157 = vector.extract_strided_slice %154 {offsets = [0, 0], sizes = [8, 32], strides = [1, 1]} : vector<16x32xf32> to vector<8x32xf32>
    %158 = vector.extract_strided_slice %155 {offsets = [0, 0], sizes = [8, 32], strides = [1, 1]} : vector<16x32xf32> to vector<8x32xf32>
    %159 = vector.extract_strided_slice %156 {offsets = [0, 0], sizes = [8, 32], strides = [1, 1]} : vector<16x32xf32> to vector<8x32xf32>
    %160 = tpu.concatenate %158, %158, %158, %158 in 0 : vector<8x32xf32>, vector<8x32xf32>, vector<8x32xf32>, vector<8x32xf32> -> vector<32x32xf32>
    %161 = arith.mulf %160, %1 : vector<32x32xf32>
    %162 = tpu.concatenate %159, %159, %159, %159 in 0 : vector<8x32xf32>, vector<8x32xf32>, vector<8x32xf32>, vector<8x32xf32> -> vector<32x32xf32>
    %163 = arith.mulf %162, %1 : vector<32x32xf32>
    %cst_76 = arith.constant dense<0.000000e+00> : vector<8x32xf32>
    %164 = tpu.matmul %157, %161, %cst_76 {dimension_numbers = #tpu.dot_dimension_numbers<[1], [1], [0], [0], [0, 0, 1, 0], [], []>} : vector<8x32xf32>, vector<32x32xf32>, vector<8x32xf32> -> vector<8x32xf32>
    %c0_77 = arith.constant 0 : index
    %c0_78 = arith.constant 0 : index
    %165 = vector.load %arg2[%c0_77, %c0_78] : memref<2x32xf32, #tpu.memory_space<vmem>>, vector<1x32xf32>
    %166 = vector.broadcast %165 : vector<1x32xf32> to vector<8x32xf32>
    %167 = arith.addf %164, %166 : vector<8x32xf32>
    %cst_79 = arith.constant dense<0xFF800000> : vector<8xf32>
    %168 = vector.multi_reduction <maximumf>, %167, %cst_79 [1] : vector<8x32xf32> to vector<8xf32>
    %169 = vector.shape_cast %168 : vector<8xf32> to vector<8x1xf32>
    %170 = vector.broadcast %169 : vector<8x1xf32> to vector<8x32xf32>
    %171 = arith.subf %167, %170 : vector<8x32xf32>
    %172 = math.exp %171 : vector<8x32xf32>
    %cst_80 = arith.constant dense<0.000000e+00> : vector<8x32xf32>
    %173 = tpu.matmul %172, %2, %cst_80 {dimension_numbers = #tpu.dot_dimension_numbers<[1], [0], [0], [1], [0, 0, 1, 1], [], []>} : vector<8x32xf32>, vector<32x32xf32>, vector<8x32xf32> -> vector<8x32xf32>
    %174 = tpu.reciprocal %173 {approx = true} : vector<8x32xf32> -> vector<8x32xf32>
    %175 = arith.mulf %172, %174 : vector<8x32xf32>
    %cst_81 = arith.constant dense<0.000000e+00> : vector<8x32xf32>
    %176 = tpu.matmul %175, %163, %cst_81 {dimension_numbers = #tpu.dot_dimension_numbers<[1], [0], [0], [1], [0, 0, 1, 1], [], []>} : vector<8x32xf32>, vector<32x32xf32>, vector<8x32xf32> -> vector<8x32xf32>
    %177 = vector.extract_strided_slice %154 {offsets = [8, 0], sizes = [8, 32], strides = [1, 1]} : vector<16x32xf32> to vector<8x32xf32>
    %178 = vector.extract_strided_slice %155 {offsets = [8, 0], sizes = [8, 32], strides = [1, 1]} : vector<16x32xf32> to vector<8x32xf32>
    %179 = vector.extract_strided_slice %156 {offsets = [8, 0], sizes = [8, 32], strides = [1, 1]} : vector<16x32xf32> to vector<8x32xf32>
    %180 = tpu.concatenate %178, %178, %178, %178 in 0 : vector<8x32xf32>, vector<8x32xf32>, vector<8x32xf32>, vector<8x32xf32> -> vector<32x32xf32>
    %181 = arith.mulf %180, %1 : vector<32x32xf32>
    %182 = tpu.concatenate %179, %179, %179, %179 in 0 : vector<8x32xf32>, vector<8x32xf32>, vector<8x32xf32>, vector<8x32xf32> -> vector<32x32xf32>
    %183 = arith.mulf %182, %1 : vector<32x32xf32>
    %cst_82 = arith.constant dense<0.000000e+00> : vector<8x32xf32>
    %184 = tpu.matmul %177, %181, %cst_82 {dimension_numbers = #tpu.dot_dimension_numbers<[1], [1], [0], [0], [0, 0, 1, 0], [], []>} : vector<8x32xf32>, vector<32x32xf32>, vector<8x32xf32> -> vector<8x32xf32>
    %c1_83 = arith.constant 1 : index
    %c0_84 = arith.constant 0 : index
    %185 = vector.load %arg2[%c1_83, %c0_84] : memref<2x32xf32, #tpu.memory_space<vmem>>, vector<1x32xf32>
    %186 = vector.broadcast %185 : vector<1x32xf32> to vector<8x32xf32>
    %187 = arith.addf %184, %186 : vector<8x32xf32>
    %cst_85 = arith.constant dense<0xFF800000> : vector<8xf32>
    %188 = vector.multi_reduction <maximumf>, %187, %cst_85 [1] : vector<8x32xf32> to vector<8xf32>
    %189 = vector.shape_cast %188 : vector<8xf32> to vector<8x1xf32>
    %190 = vector.broadcast %189 : vector<8x1xf32> to vector<8x32xf32>
    %191 = arith.subf %187, %190 : vector<8x32xf32>
    %192 = math.exp %191 : vector<8x32xf32>
    %cst_86 = arith.constant dense<0.000000e+00> : vector<8x32xf32>
    %193 = tpu.matmul %192, %2, %cst_86 {dimension_numbers = #tpu.dot_dimension_numbers<[1], [0], [0], [1], [0, 0, 1, 1], [], []>} : vector<8x32xf32>, vector<32x32xf32>, vector<8x32xf32> -> vector<8x32xf32>
    %194 = tpu.reciprocal %193 {approx = true} : vector<8x32xf32> -> vector<8x32xf32>
    %195 = arith.mulf %192, %194 : vector<8x32xf32>
    %cst_87 = arith.constant dense<0.000000e+00> : vector<8x32xf32>
    %196 = tpu.matmul %195, %183, %cst_87 {dimension_numbers = #tpu.dot_dimension_numbers<[1], [0], [0], [1], [0, 0, 1, 1], [], []>} : vector<8x32xf32>, vector<32x32xf32>, vector<8x32xf32> -> vector<8x32xf32>
    %197 = tpu.concatenate %176, %196 in 0 : vector<8x32xf32>, vector<8x32xf32> -> vector<16x32xf32>
    %198 = arith.truncf %197 : vector<16x32xf32> to vector<16x32xbf16>
    %c1_88 = arith.constant 1 : index
    %c0_89 = arith.constant 0 : index
    %c0_90 = arith.constant 0 : index
    %199 = vector.load %arg7[%c1_88, %c0_89, %c0_90] : memref<2x32x32xbf16, #tpu.memory_space<vmem>>, vector<1x32x32xbf16>
    %200 = vector.shape_cast %199 : vector<1x32x32xbf16> to vector<32x32xbf16>
    %cst_91 = arith.constant dense<0.000000e+00> : vector<16x32xf32>
    %201 = tpu.matmul %198, %200, %cst_91 {dimension_numbers = #tpu.dot_dimension_numbers<[1], [0], [0], [1], [0, 0, 1, 1], [], []>} : vector<16x32xbf16>, vector<32x32xbf16>, vector<16x32xf32> -> vector<16x32xf32>
    %c1_92 = arith.constant 1 : index
    %c0_93 = arith.constant 0 : index
    %c0_94 = arith.constant 0 : index
    %202 = vector.load %arg8[%c1_92, %c0_93, %c0_94] : memref<2x1x32xf32, #tpu.memory_space<vmem>>, vector<1x1x32xf32>
    %203 = vector.shape_cast %202 : vector<1x1x32xf32> to vector<1x32xf32>
    %204 = vector.broadcast %203 : vector<1x32xf32> to vector<16x32xf32>
    %205 = arith.addf %201, %204 : vector<16x32xf32>
    %206 = arith.addf %205, %145 : vector<16x32xf32>
    %c1_95 = arith.constant 1 : index
    %c0_96 = arith.constant 0 : index
    %c0_97 = arith.constant 0 : index
    %207 = vector.load %arg9[%c1_95, %c0_96, %c0_97] : memref<2x1x32xf32, #tpu.memory_space<vmem>>, vector<1x1x32xf32>
    %208 = vector.shape_cast %207 : vector<1x1x32xf32> to vector<1x32xf32>
    %c1_98 = arith.constant 1 : index
    %c0_99 = arith.constant 0 : index
    %c0_100 = arith.constant 0 : index
    %209 = vector.load %arg10[%c1_98, %c0_99, %c0_100] : memref<2x1x32xf32, #tpu.memory_space<vmem>>, vector<1x1x32xf32>
    %210 = vector.shape_cast %209 : vector<1x1x32xf32> to vector<1x32xf32>
    %cst_101 = arith.constant dense<0.000000e+00> : vector<16xf32>
    %211 = vector.multi_reduction <add>, %206, %cst_101 [1] : vector<16x32xf32> to vector<16xf32>
    %212 = vector.shape_cast %211 : vector<16xf32> to vector<16x1xf32>
    %cst_102 = arith.constant 3.200000e+01 : f32
    %213 = vector.broadcast %cst_102 : f32 to vector<16x1xf32>
    %214 = arith.divf %212, %213 : vector<16x1xf32>
    %215 = vector.broadcast %214 : vector<16x1xf32> to vector<16x32xf32>
    %216 = arith.subf %206, %215 : vector<16x32xf32>
    %217 = arith.mulf %216, %216 : vector<16x32xf32>
    %cst_103 = arith.constant dense<0.000000e+00> : vector<16xf32>
    %218 = vector.multi_reduction <add>, %217, %cst_103 [1] : vector<16x32xf32> to vector<16xf32>
    %219 = vector.shape_cast %218 : vector<16xf32> to vector<16x1xf32>
    %cst_104 = arith.constant 3.200000e+01 : f32
    %220 = vector.broadcast %cst_104 : f32 to vector<16x1xf32>
    %221 = arith.divf %219, %220 : vector<16x1xf32>
    %222 = vector.broadcast %214 : vector<16x1xf32> to vector<16x32xf32>
    %223 = arith.subf %206, %222 : vector<16x32xf32>
    %cst_105 = arith.constant 9.99999996E-13 : f32
    %224 = vector.broadcast %cst_105 : f32 to vector<16x1xf32>
    %225 = arith.addf %221, %224 : vector<16x1xf32>
    %226 = math.rsqrt %225 : vector<16x1xf32>
    %227 = vector.broadcast %226 : vector<16x1xf32> to vector<16x32xf32>
    %228 = arith.mulf %223, %227 : vector<16x32xf32>
    %229 = vector.broadcast %208 : vector<1x32xf32> to vector<16x32xf32>
    %230 = arith.mulf %228, %229 : vector<16x32xf32>
    %231 = vector.broadcast %210 : vector<1x32xf32> to vector<16x32xf32>
    %232 = arith.addf %230, %231 : vector<16x32xf32>
    %233 = arith.truncf %232 : vector<16x32xf32> to vector<16x32xbf16>
    %c1_106 = arith.constant 1 : index
    %c0_107 = arith.constant 0 : index
    %c0_108 = arith.constant 0 : index
    %234 = vector.load %arg11[%c1_106, %c0_107, %c0_108] : memref<2x32x128xbf16, #tpu.memory_space<vmem>>, vector<1x32x128xbf16>
    %235 = vector.shape_cast %234 : vector<1x32x128xbf16> to vector<32x128xbf16>
    %cst_109 = arith.constant dense<0.000000e+00> : vector<16x128xf32>
    %236 = tpu.matmul %233, %235, %cst_109 {dimension_numbers = #tpu.dot_dimension_numbers<[1], [0], [0], [1], [0, 0, 1, 1], [], []>} : vector<16x32xbf16>, vector<32x128xbf16>, vector<16x128xf32> -> vector<16x128xf32>
    %c1_110 = arith.constant 1 : index
    %c0_111 = arith.constant 0 : index
    %c0_112 = arith.constant 0 : index
    %237 = vector.load %arg12[%c1_110, %c0_111, %c0_112] : memref<2x1x128xf32, #tpu.memory_space<vmem>>, vector<1x1x128xf32>
    %238 = vector.shape_cast %237 : vector<1x1x128xf32> to vector<1x128xf32>
    %239 = vector.broadcast %238 : vector<1x128xf32> to vector<16x128xf32>
    %240 = arith.addf %236, %239 : vector<16x128xf32>
    %cst_113 = arith.constant 5.000000e-01 : f32
    %241 = vector.broadcast %cst_113 : f32 to vector<16x128xf32>
    %242 = arith.mulf %241, %240 : vector<16x128xf32>
    %cst_114 = arith.constant 4.471500e-02 : f32
    %243 = vector.broadcast %cst_114 : f32 to vector<16x128xf32>
    %244 = arith.mulf %243, %240 : vector<16x128xf32>
    %245 = arith.mulf %244, %240 : vector<16x128xf32>
    %246 = arith.mulf %245, %240 : vector<16x128xf32>
    %247 = arith.addf %240, %246 : vector<16x128xf32>
    %cst_115 = arith.constant 0.797884583 : f32
    %248 = vector.broadcast %cst_115 : f32 to vector<16x128xf32>
    %249 = arith.mulf %248, %247 : vector<16x128xf32>
    %250 = math.tanh %249 : vector<16x128xf32>
    %cst_116 = arith.constant 1.000000e+00 : f32
    %251 = vector.broadcast %cst_116 : f32 to vector<16x128xf32>
    %252 = arith.addf %251, %250 : vector<16x128xf32>
    %253 = arith.mulf %242, %252 : vector<16x128xf32>
    %254 = arith.truncf %253 : vector<16x128xf32> to vector<16x128xbf16>
    %c1_117 = arith.constant 1 : index
    %c0_118 = arith.constant 0 : index
    %c0_119 = arith.constant 0 : index
    %255 = vector.load %arg13[%c1_117, %c0_118, %c0_119] : memref<2x128x32xbf16, #tpu.memory_space<vmem>>, vector<1x128x32xbf16>
    %256 = vector.shape_cast %255 : vector<1x128x32xbf16> to vector<128x32xbf16>
    %cst_120 = arith.constant dense<0.000000e+00> : vector<16x32xf32>
    %257 = tpu.matmul %254, %256, %cst_120 {dimension_numbers = #tpu.dot_dimension_numbers<[1], [0], [0], [1], [0, 0, 1, 1], [], []>} : vector<16x128xbf16>, vector<128x32xbf16>, vector<16x32xf32> -> vector<16x32xf32>
    %c1_121 = arith.constant 1 : index
    %c0_122 = arith.constant 0 : index
    %c0_123 = arith.constant 0 : index
    %258 = vector.load %arg14[%c1_121, %c0_122, %c0_123] : memref<2x1x32xf32, #tpu.memory_space<vmem>>, vector<1x1x32xf32>
    %259 = vector.shape_cast %258 : vector<1x1x32xf32> to vector<1x32xf32>
    %260 = vector.broadcast %259 : vector<1x32xf32> to vector<16x32xf32>
    %261 = arith.addf %257, %260 : vector<16x32xf32>
    %262 = arith.addf %261, %232 : vector<16x32xf32>
    %c1_124 = arith.constant 1 : index
    %c0_125 = arith.constant 0 : index
    %c0_126 = arith.constant 0 : index
    %263 = vector.load %arg15[%c1_124, %c0_125, %c0_126] : memref<2x1x32xf32, #tpu.memory_space<vmem>>, vector<1x1x32xf32>
    %264 = vector.shape_cast %263 : vector<1x1x32xf32> to vector<1x32xf32>
    %c1_127 = arith.constant 1 : index
    %c0_128 = arith.constant 0 : index
    %c0_129 = arith.constant 0 : index
    %265 = vector.load %arg16[%c1_127, %c0_128, %c0_129] : memref<2x1x32xf32, #tpu.memory_space<vmem>>, vector<1x1x32xf32>
    %266 = vector.shape_cast %265 : vector<1x1x32xf32> to vector<1x32xf32>
    %cst_130 = arith.constant dense<0.000000e+00> : vector<16xf32>
    %267 = vector.multi_reduction <add>, %262, %cst_130 [1] : vector<16x32xf32> to vector<16xf32>
    %268 = vector.shape_cast %267 : vector<16xf32> to vector<16x1xf32>
    %cst_131 = arith.constant 3.200000e+01 : f32
    %269 = vector.broadcast %cst_131 : f32 to vector<16x1xf32>
    %270 = arith.divf %268, %269 : vector<16x1xf32>
    %271 = vector.broadcast %270 : vector<16x1xf32> to vector<16x32xf32>
    %272 = arith.subf %262, %271 : vector<16x32xf32>
    %273 = arith.mulf %272, %272 : vector<16x32xf32>
    %cst_132 = arith.constant dense<0.000000e+00> : vector<16xf32>
    %274 = vector.multi_reduction <add>, %273, %cst_132 [1] : vector<16x32xf32> to vector<16xf32>
    %275 = vector.shape_cast %274 : vector<16xf32> to vector<16x1xf32>
    %cst_133 = arith.constant 3.200000e+01 : f32
    %276 = vector.broadcast %cst_133 : f32 to vector<16x1xf32>
    %277 = arith.divf %275, %276 : vector<16x1xf32>
    %278 = vector.broadcast %270 : vector<16x1xf32> to vector<16x32xf32>
    %279 = arith.subf %262, %278 : vector<16x32xf32>
    %cst_134 = arith.constant 9.99999996E-13 : f32
    %280 = vector.broadcast %cst_134 : f32 to vector<16x1xf32>
    %281 = arith.addf %277, %280 : vector<16x1xf32>
    %282 = math.rsqrt %281 : vector<16x1xf32>
    %283 = vector.broadcast %282 : vector<16x1xf32> to vector<16x32xf32>
    %284 = arith.mulf %279, %283 : vector<16x32xf32>
    %285 = vector.broadcast %264 : vector<1x32xf32> to vector<16x32xf32>
    %286 = arith.mulf %284, %285 : vector<16x32xf32>
    %287 = vector.broadcast %266 : vector<1x32xf32> to vector<16x32xf32>
    %288 = arith.addf %286, %287 : vector<16x32xf32>
    %c0_135 = arith.constant 0 : index
    %c0_136 = arith.constant 0 : index
    %289 = vector.load %arg17[%c0_135, %c0_136] : memref<16x32xf32, #tpu.memory_space<vmem>>, vector<16x32xf32>
    tpu.vector_store %arg17[%c0_135, %c0_136], %288 {strides = array<i32>} : memref<16x32xf32, #tpu.memory_space<vmem>>, vector<16x32xf32>,
    return
  }
  func.func @transform_0(%arg0: i32) -> (i32, i32) {
    %c0_i32 = arith.constant 0 : i32
    %c0_i32_0 = arith.constant 0 : i32
    %c0_i32_1 = arith.constant 0 : i32
    return %c0_i32, %c0_i32_0 : i32, i32
  }
  func.func @transform_1(%arg0: i32) -> (i32, i32) {
    %c0_i32 = arith.constant 0 : i32
    %c0_i32_0 = arith.constant 0 : i32
    %c0_i32_1 = arith.constant 0 : i32
    return %c0_i32, %c0_i32_0 : i32, i32
  }
  func.func @transform_2(%arg0: i32) -> (i32, i32) {
    %c0_i32 = arith.constant 0 : i32
    %c0_i32_0 = arith.constant 0 : i32
    %c0_i32_1 = arith.constant 0 : i32
    return %c0_i32, %c0_i32_0 : i32, i32
  }
  func.func @transform_3(%arg0: i32) -> (i32, i32) {
    %c0_i32 = arith.constant 0 : i32
    %c0_i32_0 = arith.constant 0 : i32
    %c0_i32_1 = arith.constant 0 : i32
    return %c0_i32, %c0_i32_0 : i32, i32
  }
  func.func @transform_4(%arg0: i32) -> (i32, i32, i32) {
    %c0_i32 = arith.constant 0 : i32
    %c0_i32_0 = arith.constant 0 : i32
    %c0_i32_1 = arith.constant 0 : i32
    %c0_i32_2 = arith.constant 0 : i32
    return %c0_i32, %c0_i32_0, %c0_i32_1 : i32, i32, i32
  }
  func.func @transform_5(%arg0: i32) -> (i32, i32, i32) {
    %c0_i32 = arith.constant 0 : i32
    %c0_i32_0 = arith.constant 0 : i32
    %c0_i32_1 = arith.constant 0 : i32
    %c0_i32_2 = arith.constant 0 : i32
    return %c0_i32, %c0_i32_0, %c0_i32_1 : i32, i32, i32
  }
  func.func @transform_6(%arg0: i32) -> (i32, i32, i32) {
    %c0_i32 = arith.constant 0 : i32
    %c0_i32_0 = arith.constant 0 : i32
    %c0_i32_1 = arith.constant 0 : i32
    %c0_i32_2 = arith.constant 0 : i32
    return %c0_i32, %c0_i32_0, %c0_i32_1 : i32, i32, i32
  }
  func.func @transform_7(%arg0: i32) -> (i32, i32, i32) {
    %c0_i32 = arith.constant 0 : i32
    %c0_i32_0 = arith.constant 0 : i32
    %c0_i32_1 = arith.constant 0 : i32
    %c0_i32_2 = arith.constant 0 : i32
    return %c0_i32, %c0_i32_0, %c0_i32_1 : i32, i32, i32
  }
  func.func @transform_8(%arg0: i32) -> (i32, i32, i32) {
    %c0_i32 = arith.constant 0 : i32
    %c0_i32_0 = arith.constant 0 : i32
    %c0_i32_1 = arith.constant 0 : i32
    %c0_i32_2 = arith.constant 0 : i32
    return %c0_i32, %c0_i32_0, %c0_i32_1 : i32, i32, i32
  }
  func.func @transform_9(%arg0: i32) -> (i32, i32, i32) {
    %c0_i32 = arith.constant 0 : i32
    %c0_i32_0 = arith.constant 0 : i32
    %c0_i32_1 = arith.constant 0 : i32
    %c0_i32_2 = arith.constant 0 : i32
    return %c0_i32, %c0_i32_0, %c0_i32_1 : i32, i32, i32
  }
  func.func @transform_10(%arg0: i32) -> (i32, i32, i32) {
    %c0_i32 = arith.constant 0 : i32
    %c0_i32_0 = arith.constant 0 : i32
    %c0_i32_1 = arith.constant 0 : i32
    %c0_i32_2 = arith.constant 0 : i32
    return %c0_i32, %c0_i32_0, %c0_i32_1 : i32, i32, i32
  }
  func.func @transform_11(%arg0: i32) -> (i32, i32, i32) {
    %c0_i32 = arith.constant 0 : i32
    %c0_i32_0 = arith.constant 0 : i32
    %c0_i32_1 = arith.constant 0 : i32
    %c0_i32_2 = arith.constant 0 : i32
    return %c0_i32, %c0_i32_0, %c0_i32_1 : i32, i32, i32
  }
  func.func @transform_12(%arg0: i32) -> (i32, i32, i32) {
    %c0_i32 = arith.constant 0 : i32
    %c0_i32_0 = arith.constant 0 : i32
    %c0_i32_1 = arith.constant 0 : i32
    %c0_i32_2 = arith.constant 0 : i32
    return %c0_i32, %c0_i32_0, %c0_i32_1 : i32, i32, i32
  }
  func.func @transform_13(%arg0: i32) -> (i32, i32, i32) {
    %c0_i32 = arith.constant 0 : i32
    %c0_i32_0 = arith.constant 0 : i32
    %c0_i32_1 = arith.constant 0 : i32
    %c0_i32_2 = arith.constant 0 : i32
    return %c0_i32, %c0_i32_0, %c0_i32_1 : i32, i32, i32
  }
  func.func @transform_14(%arg0: i32) -> (i32, i32, i32) {
    %c0_i32 = arith.constant 0 : i32
    %c0_i32_0 = arith.constant 0 : i32
    %c0_i32_1 = arith.constant 0 : i32
    %c0_i32_2 = arith.constant 0 : i32
    return %c0_i32, %c0_i32_0, %c0_i32_1 : i32, i32, i32
  }
  func.func @transform_15(%arg0: i32) -> (i32, i32, i32) {
    %c0_i32 = arith.constant 0 : i32
    %c0_i32_0 = arith.constant 0 : i32
    %c0_i32_1 = arith.constant 0 : i32
    %c0_i32_2 = arith.constant 0 : i32
    return %c0_i32, %c0_i32_0, %c0_i32_1 : i32, i32, i32
  }
  func.func @transform_16(%arg0: i32) -> (i32, i32) {
    %c0_i32 = arith.constant 0 : i32
    %c0_i32_0 = arith.constant 0 : i32
    %c0_i32_1 = arith.constant 0 : i32
    return %c0_i32, %c0_i32_0 : i32, i32
  }
}

</mosaic_0001>

<bundles_post_ra>
// kernel: tile.9
= control target key start
LH: loop header
LB: loop body
LE: loop exit
PB: predicated region body
PF: predicated region fallthrough
CT: control target
= control target key end

     0   :  { %s29_s10 = smov 3  ;;  %s45_s11 = smov 24   ;;  %vm12_vm0 = vcmask 64512   ;;  %vm19_vm1 = vcmask 261312   ;;  %vm26_vm2 = vcmask 195712   ;;  %vm33_vm3 = vcmask 130112   ;;  %s67_s0 = inlined_call_operand.vmem [shape: f32[2,4,8], index: 0, kind: input, shape index: {}]   ;;  %s68_s1 = inlined_call_operand.vmem [shape: f32[2,32], index: 1, kind: output, shape index: {}]  }
   0x1   :  { %v41_v0 = vld [vmem:[%s67_s0 + $0x4] sm:$0xf]  ;;  %v8_v1 = vld [vmem:[%s67_s0] sm:$0xf]  ;;  %s15_s0 = smov 3  ;;  %s46_s12 = smov 8  }
   0x2   :  { %7 = vst [vmem:[#allocation1 + $0x8] sm:$0xf] %v41_v0  ;;  %s22_s13 = smov 3  ;;  %s47_s14 = smov 16  }
   0x3   :  { %9 = vst [vmem:[#allocation1] sm:$0xf] %v8_v1  ;;  %s10_s15 = smov 3 }
   0xa   :  { %v16_v2 = vld [vmem:[#allocation1 + $0x3] ss:$8 sm:%s15_s0]   ;;  %v30_v3 = vld [vmem:[#allocation1 + $0x1] ss:$8 sm:%s29_s10]   ;;  %v23_v4 = vld [vmem:[#allocation1 + $0x2] ss:$8 sm:%s22_s13]  }
   0xb   :  { %17 = vrot.lane.b32.xlu0 %v16_v2, %s45_s11  ;;  %31 = vrot.lane.b32.xlu1 %v30_v3, %s46_s12  ;;  %v11_v5 = vld [vmem:[#allocation1] ss:$8 sm:%s10_s15]  }
   0xc   :  { %13 = vst.msk [vmem:[#allocation0] sm:$0x3] %vm12_vm0, %v11_v5  }
  0x13   :  { %24 = vrot.lane.b32.xlu0 %v23_v4, %s47_s14 }
  0x7d   :  { %v18_v6 = vpop.permute.xlu0 %17   ;;  %v32_v7 = vpop.permute.xlu1 %31  }
  0x7e   :  { %20 = vst.msk [vmem:[#allocation0] sm:$0x3] %vm19_vm1, %v18_v6  }
  0x85   :  { %v25_v8 = vpop.permute.xlu0 %24  }
  0x86   :  { %27 = vst.msk [vmem:[#allocation0] sm:$0x3] %vm26_vm2, %v25_v8  }
  0x87   :  { %34 = vst.msk [vmem:[#allocation0] sm:$0x3] %vm33_vm3, %v32_v7  }
  0x8e   :  { %v37_v9 = vld [vmem:[#allocation0] sm:$0x3] }
  0x8f   :  { %40 = vst [vmem:[%s68_s1] sm:$0x3] %v37_v9 }

// kernel: _lambda_.3
= control target key start
LH: loop header
LB: loop body
LE: loop exit
PB: predicated region body
PF: predicated region fallthrough
CT: control target
= control target key end

     0   :  { %s927_s24 = smov 32   ;;  %s928_s25 = smov 96   ;;  %vm147_vm0 = vcmask 1043456   ;;  %vm43_vm1 = vcmask 261120   ;;  %vm45_vm2 = vcmask 523264   ;;  %vm118_vm3 = vcmask 785408   ;;  %s1170_s0 = inlined_call_operand.vmem [shape: f32[2,8,32], index: 0, kind: input, shape index: {}]   ;;  %s1171_s2 = inlined_call_operand.vmem [shape: bf16[128,128], index: 2, kind: input, shape index: {}]   ;;  %s1172_s3 = inlined_call_operand.vmem [shape: bf16[160,128], index: 3, kind: input, shape index: {}]   ;;  %s1173_s1 = inlined_call_operand.vmem [shape: bf16[96,128], index: 1, kind: input, shape index: {}]   ;;  %s1174_s4 = inlined_call_operand.vmem [shape: f32[1,128], index: 4, kind: input, shape index: {}, may-alias: {4,5,6,8}]   ;;  %s1175_s7 = inlined_call_operand.vmem [shape: bf16[384,128], index: 7, kind: input, shape index: {}]   ;;  %s1176_s5 = inlined_call_operand.vmem [shape: f32[1,128], index: 5, kind: input, shape index: {}, may-alias: {4,5,6,8}]   ;;  %s1177_s6 = inlined_call_operand.vmem [shape: f32[1,128], index: 6, kind: input, shape index: {}, may-alias: {4,5,6,8}]   ;;  %s1178_s8 = inlined_call_operand.vmem [shape: f32[1,128], index: 8, kind: input, shape index: {}, may-alias: {4,5,6,8}]   ;;  %s1179_s9 = inlined_call_operand.vmem [shape: f32[2,128], index: 9, kind: output, shape index: {}]  }
   0x1   :  { %v983_v0 = vld [vmem:[%s1170_s0] sm:$0xff]  ;;  %v988_v1 = vld [vmem:[%s1170_s0 + $0x8] sm:$0xff]  ;;  %v870_v2 = vld [vmem:[%s1171_s2 + $0x38] sm:$0xff]  ;;  %s929_s13 = smov 64   ;;  %vm63_vm4 = vcmask 1045504   ;;  %vm171_vm5 = vcmask 1044480  }
   0x2   :  { %v35_v3 = vrot.slane %v983_v0, 1  ;;  %v50_v4 = vrot.slane %v988_v1, 1  ;;  %v878_v5 = vld [vmem:[%s1172_s3 + $0x38] sm:$0xff]  ;;  %v158_v6 = vrot.slane %v983_v0, 3  ;;  %v163_v7 = vrot.slane %v988_v1, 3  ;;  %242 = vmatpush.bf16.msra.mxu1 %v870_v2  ;;  %v869_v8 = vld [vmem:[%s1171_s2 + $0x30] sm:$0xff] }
   0x3   :  { %v862_v9 = vld [vmem:[%s1173_s1 + $0x28] sm:$0xff]  ;;  %375 = vmatpush.bf16.msra.mxu2 %v878_v5  ;;  %v877_v11 = vld [vmem:[%s1172_s3 + $0x30] sm:$0xff]  ;;  %v861_v13 = vld [vmem:[%s1173_s1 + $0x20] sm:$0xff]  ;;  %v39_v14 = vrot.slane %v983_v0, 2  ;;  %v54_v15 = vrot.slane %v988_v1, 2  ;;  %v277_v35 = vrot.slane %v983_v0, 4 }
   0x4   :  { %v908_v10 = vpack.i.bf16 %v35_v3, %v50_v4  ;;  %v918_v12 = vpack.i.bf16 %v158_v6, %v163_v7  ;;  %124 = vmatpush.bf16.msra.mxu0 %v862_v9  ;;  %v868_v16 = vld [vmem:[%s1171_s2 + $0x28] sm:$0xff]  ;;  %v867_v19 = vld [vmem:[%s1171_s2 + $0x20] sm:$0xff]  ;;  %v860_v21 = vld [vmem:[%s1173_s1 + $0x18] sm:$0xff]  ;;  %vm145_vm6 = vcmask 1047558   ;;  %vm265_vm7 = vcmask 1047557  }
   0x5   :  { %v876_v17 = vld [vmem:[%s1172_s3 + $0x28] sm:$0xff]  ;;  %v913_v18 = vpack.i.bf16 %v39_v14, %v54_v15  ;;  %v875_v20 = vld [vmem:[%s1172_s3 + $0x20] sm:$0xff]  ;;  %v866_v22 = vld [vmem:[%s1171_s2 + $0x18] sm:$0xff]  ;;  %v285_v36 = vsel %vm147_vm0, %v277_v35, %v988_v1  ;;  %vm409_vm8 = vcmask 1047556   ;;  %vm267_vm9 = vcmask 1041408  }
   0x6   :  { %909 = vrot.lane.b32.xlu0 %v908_v10, %s927_s24  ;;  %919 = vrot.lane.b32.xlu1 %v918_v12, %s928_s25  ;;  %v874_v23 = vld [vmem:[%s1172_s3 + $0x18] sm:$0xff]  ;;  %v859_v24 = vld [vmem:[%s1173_s1 + $0x10] sm:$0xff]  ;;  %v287_v37 = vpack.c.bf16 %v285_v36, %v285_v36  ;;  %vm156_vm10 = vcmask 1040384  }
   0x7   :  { %243 = vmatpush.bf16.msra.mxu1 %v869_v8  ;;  %376 = vmatpush.bf16.msra.mxu2 %v877_v11  ;;  %v865_v25 = vld [vmem:[%s1171_s2 + $0x10] sm:$0xff]  ;;  %v858_v27 = vld [vmem:[%s1173_s1 + $0x8] sm:$0xff]  ;;  %v857_v31 = vld [vmem:[%s1173_s1] sm:$0xff] }
   0x8   :  { %125 = vmatpush.bf16.msra.mxu0 %v861_v13  ;;  %v873_v26 = vld [vmem:[%s1172_s3 + $0x10] sm:$0xff]  ;;  %v864_v28 = vld [vmem:[%s1171_s2 + $0x8] sm:$0xff]  ;;  %v863_v32 = vld [vmem:[%s1171_s2] sm:$0xff] }
   0x9   :  { %v872_v29 = vld [vmem:[%s1172_s3 + $0x8] sm:$0xff]  ;;  %v871_v33 = vld [vmem:[%s1172_s3] sm:$0xff]  ;;  %v904_v38 = vld [vmem:[%s1175_s7 + $0xb8] sm:$0xff] }
   0xa   :  { %v880_v30 = vld [vmem:[%s1172_s3 + $0x48] sm:$0xff]  ;;  %v879_v34 = vld [vmem:[%s1172_s3 + $0x40] sm:$0xff]  ;;  %v888_v63 = vld [vmem:[%s1175_s7 + $0x38] sm:$0xff] }
   0xb   :  { %244 = vmatpush.bf16.msra.mxu1 %v868_v16  ;;  %377 = vmatpush.bf16.msra.mxu2 %v876_v17  ;;  %v887_v2 = vld [vmem:[%s1175_s7 + $0x30] sm:$0xff]  ;;  %v902_v4 = vld [vmem:[%s1175_s7 + $0xa8] sm:$0xff]  ;;  %v901_v8 = vld [vmem:[%s1175_s7 + $0xa0] sm:$0xff] }
   0xc   :  { %126 = vmatpush.bf16.msra.mxu0 %v860_v21  ;;  %394 = vmatpush.bf16.msra.mxu3 %v880_v30  ;;  %v895_v3 = vld [vmem:[%s1175_s7 + $0x70] sm:$0xff]  ;;  %v886_v5 = vld [vmem:[%s1175_s7 + $0x28] sm:$0xff]  ;;  %v885_v9 = vld [vmem:[%s1175_s7 + $0x20] sm:$0xff] }
   0xd   :  { %v894_v7 = vld [vmem:[%s1175_s7 + $0x68] sm:$0xff]  ;;  %v893_v10 = vld [vmem:[%s1175_s7 + $0x60] sm:$0xff]  ;;  %v900_v11 = vld [vmem:[%s1175_s7 + $0x98] sm:$0xff] }
   0xe   :  { %914 = vrot.lane.b32.xlu0 %v913_v18, %s929_s13  ;;  %v884_v12 = vld [vmem:[%s1175_s7 + $0x18] sm:$0xff]  ;;  %v899_v15 = vld [vmem:[%s1175_s7 + $0x90] sm:$0xff]  ;;  %v898_v18 = vld [vmem:[%s1175_s7 + $0x88] sm:$0xff] }
   0xf   :  { %245 = vmatpush.bf16.msra.mxu1 %v867_v19  ;;  %378 = vmatpush.bf16.msra.mxu2 %v875_v20  ;;  %v892_v14 = vld [vmem:[%s1175_s7 + $0x58] sm:$0xff]  ;;  %v883_v16 = vld [vmem:[%s1175_s7 + $0x10] sm:$0xff]  ;;  %v882_v19 = vld [vmem:[%s1175_s7 + $0x8] sm:$0xff] }
  0x10   :  { %127 = vmatpush.bf16.msra.mxu0 %v859_v24  ;;  %395 = vmatpush.bf16.msra.mxu3 %v879_v34  ;;  %v891_v17 = vld [vmem:[%s1175_s7 + $0x50] sm:$0xff]  ;;  %v890_v20 = vld [vmem:[%s1175_s7 + $0x48] sm:$0xff]  ;;  %v897_v21 = vld [vmem:[%s1175_s7 + $0x80] sm:$0xff] }
  0x11   :  { %v923_v24 = vld [vmem:[%s1174_s4] ss:$0 sm:$0xff] }
  0x13   :  { %246 = vmatpush.bf16.msra.mxu1 %v866_v22  ;;  %379 = vmatpush.bf16.msra.mxu2 %v874_v23  ;;  %v881_v22 = vld [vmem:[%s1175_s7] sm:$0xff] }
  0x14   :  { %128 = vmatpush.bf16.msra.mxu0 %v858_v27  ;;  %760 = vmatmul.msk.bf16.vlgmr.msra.gmra.mxu3 %vm43_vm1, %v287_v37  ;;  %v889_v23 = vld [vmem:[%s1175_s7 + $0x40] sm:$0xff] }
  0x15   :  { %617 = vmatpush.bf16.msrb.mxu3 %v888_v63 }
  0x17   :  { %247 = vmatpush.bf16.msra.mxu1 %v865_v25  ;;  %380 = vmatpush.bf16.msra.mxu2 %v873_v26  ;;  %v924_v25 = vld [vmem:[%s1176_s5] ss:$0 sm:$0xff] }
  0x18   :  { %129 = vmatpush.bf16.msra.mxu0 %v857_v31 }
  0x19   :  { %618 = vmatpush.bf16.msrb.mxu3 %v887_v2 }
  0x1b   :  { %248 = vmatpush.bf16.msra.mxu1 %v864_v28  ;;  %381 = vmatpush.bf16.msra.mxu2 %v872_v29 }
  0x1d   :  { %619 = vmatpush.bf16.msrb.mxu3 %v886_v5 }
  0x1f   :  { %249 = vmatpush.bf16.msra.mxu1 %v863_v32  ;;  %382 = vmatpush.bf16.msra.mxu2 %v871_v33  ;;  %v925_v32 = vld [vmem:[%s1177_s6] ss:$0 sm:$0xff] }
  0x21   :  { %620 = vmatpush.bf16.msrb.mxu3 %v885_v9 }
  0x23   :  { %643 = vmatpush.bf16.msrb.mxu1 %v904_v38 }
  0x25   :  { %621 = vmatpush.bf16.msrb.mxu3 %v884_v12 }
  0x29   :  { %622 = vmatpush.bf16.msrb.mxu3 %v883_v16 }
  0x2d   :  { %623 = vmatpush.bf16.msrb.mxu3 %v882_v19 }
  0x31   :  { %624 = vmatpush.bf16.msrb.mxu3 %v881_v22 }
  0x78   :  { %v910_v39 = vpop.permute.xlu0 %909  ;;  %v920_v40 = vpop.permute.xlu1 %919 }
  0x79   :  { %v912_v41 = vunpack.i.h.bf16 %v910_v39  ;;  %v911_v42 = vunpack.i.l.bf16 %v910_v39  ;;  %v921_v44 = vunpack.i.l.bf16 %v920_v40  ;;  %v922_v49 = vunpack.i.h.bf16 %v920_v40 }
  0x7b   :  { %v44_v47 = vsel %vm43_vm1, %v983_v0, %v912_v41  ;;  %v58_v48 = vsel %vm43_vm1, %v988_v1, %v911_v42  ;;  %v896_v0 = vld [vmem:[%s1175_s7 + $0x78] sm:$0xff]  ;;  %v903_v1 = vld [vmem:[%s1175_s7 + $0xb0] sm:$0xff] }
  0x7c   :  { %630 = vmatpush.bf16.msrb.mxu0 %v896_v0  ;;  %644 = vmatpush.bf16.msrb.mxu1 %v903_v1 }
  0x80   :  { %v915_v43 = vpop.permute.xlu0 %914  ;;  %631 = vmatpush.bf16.msrb.mxu0 %v895_v3  ;;  %645 = vmatpush.bf16.msrb.mxu1 %v902_v4 }
  0x81   :  { %v917_v45 = vunpack.i.h.bf16 %v915_v43  ;;  %v916_v46 = vunpack.i.l.bf16 %v915_v43 }
  0x83   :  { %v46_v50 = vsel %vm45_vm2, %v44_v47, %v917_v45  ;;  %v59_v51 = vsel %vm45_vm2, %v58_v48, %v916_v46 }
  0x84   :  { %v61_v52 = vrot.slane %v59_v51, 2  ;;  %v167_v53 = vsel %vm118_vm3, %v59_v51, %v921_v44  ;;  %v162_v57 = vsel %vm118_vm3, %v46_v50, %v922_v49  ;;  %632 = vmatpush.bf16.msrb.mxu0 %v894_v7  ;;  %646 = vmatpush.bf16.msrb.mxu1 %v901_v8 }
  0x85   :  { %v280_v54 = vrot.slane %v167_v53, 4  ;;  %v169_v55 = vrot.slane %v167_v53, 3 }
  0x86   :  { %v64_v56 = vsel %vm63_vm4, %v46_v50, %v61_v52 }
  0x87   :  { %v65_v58 = vpack.c.bf16 %v61_v52, %v64_v56  ;;  %v172_v59 = vsel %vm171_vm5, %v162_v57, %v169_v55  ;;  %v284_v60 = vsel %vm147_vm0, %v162_v57, %v280_v54 }
  0x88   :  { %v173_v61 = vpack.c.bf16 %v169_v55, %v172_v59  ;;  %v286_v62 = vpack.c.bf16 %v284_v60, %v284_v60  ;;  %633 = vmatpush.bf16.msrb.mxu0 %v893_v10  ;;  %647 = vmatpush.bf16.msrb.mxu1 %v900_v11 }
  0x89   :  { %686 = vmatmul.msk.bf16.vlgmr.msra.gmra.mxu0 %vm118_vm3, %v65_v58 }
  0x8a   :  { %250 = vmatmul.bf16.vlgmr.msra.gmra.mxu1 %v173_v61  ;;  %383 = vmatmul.bf16.vlgmr.msra.gmra.mxu2 %v286_v62 }
  0x8c   :  { %634 = vmatpush.bf16.msrb.mxu0 %v892_v14  ;;  %648 = vmatpush.bf16.msrb.mxu1 %v899_v15 }
  0x90   :  { %635 = vmatpush.bf16.msrb.mxu0 %v891_v17  ;;  %649 = vmatpush.bf16.msrb.mxu1 %v898_v18 }
  0x94   :  { %636 = vmatpush.bf16.msrb.mxu0 %v890_v20  ;;  %650 = vmatpush.bf16.msrb.mxu1 %v897_v21 }
  0x97   :  { %v397_v6 = vpop.f32.mrf.mxu3 }
  0x98   :  { %637 = vmatpush.bf16.msrb.mxu0 %v889_v23 }
  0x9f   :  { %v399_v13 = vpop.f32.mrf.mxu3 }
 0x106   :  { %v131_v26 = vpop.f32.mrf.mxu0 }
 0x107   :  { %v132_v27 = vadd.f32 %v923_v24, %v131_v26  ;;  %v251_v28 = vpop.f32.mrf.mxu1 }
 0x108   :  { %v252_v29 = vadd.f32 %v924_v25, %v251_v28 }
 0x109   :  { %v136_v30 = vmax.f32 %v132_v27, 0.0 }
 0x10a   :  { %v256_v31 = vmax.f32 %v252_v29, 0.0 }
 0x10b   :  { %v138_v33 = vsel %vm63_vm4, %v136_v30, -inf  ;;  %v146_v49 = vsel %vm145_vm6, %v136_v30, -inf }
 0x10c   :  { %v139_v34 = vrot.slane %v138_v33, 4  ;;  %v258_v35 = vsel %vm171_vm5, %v256_v31, -inf  ;;  %v266_v55 = vsel %vm265_vm7, %v256_v31, -inf }
 0x10d   :  { %v384_v36 = vpop.f32.mrf.mxu2  ;;  %v259_v37 = vrot.slane %v258_v35, 4 }
 0x10e   :  { %v385_v38 = vadd.f32 %v925_v32, %v384_v36  ;;  %v133_v39 = vpop.f32.mrf.mxu0  ;;  %v140_v42 = vmax.f32 %v138_v33, %v139_v34  ;;  %v926_v34 = vld [vmem:[%s1178_s8] ss:$0 sm:$0xff] }
 0x10f   :  { %v134_v40 = vadd.f32 %v923_v24, %v133_v39  ;;  %v253_v41 = vpop.f32.mrf.mxu1  ;;  %v260_v46 = vmax.f32 %v258_v35, %v259_v37 }
 0x110   :  { %v398_v43 = vadd.f32 %v397_v6, %v385_v38  ;;  %v254_v44 = vadd.f32 %v924_v25, %v253_v41  ;;  %v141_v51 = vrot.slane %v140_v42, 2 }
 0x111   :  { %v137_v45 = vmax.f32 %v134_v40, 0.0  ;;  %v261_v60 = vrot.slane %v260_v46, 2 }
 0x112   :  { %v401_v47 = vmax.f32 %v398_v43, 0.0  ;;  %v257_v48 = vmax.f32 %v254_v44, 0.0  ;;  %v142_v1 = vmax.f32 %v140_v42, %v141_v51 }
 0x113   :  { %v148_v50 = vsel %vm147_vm0, %v137_v45, -inf  ;;  %v262_v6 = vmax.f32 %v260_v46, %v261_v60 }
 0x114   :  { %v149_v52 = vmax.f32 %v146_v49, %v148_v50  ;;  %v402_v53 = vsel %vm147_vm0, %v401_v47, -inf  ;;  %v410_v54 = vsel %vm409_vm8, %v401_v47, -inf  ;;  %v268_v58 = vsel %vm267_vm9, %v257_v48, -inf }
 0x115   :  { %v403_v56 = vrot.slane %v402_v53, 4  ;;  %v411_v57 = vrot.slane %v410_v54, 4  ;;  %v386_v59 = vpop.f32.mrf.mxu2  ;;  %v269_v62 = vmax.f32 %v266_v55, %v268_v58  ;;  %v143_v11 = vrot.slane %v142_v1, 1 }
 0x116   :  { %v150_v61 = vrot.slane %v149_v52, 4  ;;  %v263_v16 = vrot.slane %v262_v6, 1 }
 0x117   :  { %v404_v63 = vmax.f32 %v402_v53, %v403_v56  ;;  %v412_v0 = vmax.f32 %v410_v54, %v411_v57  ;;  %v270_v3 = vrot.slane %v269_v62, 4  ;;  %v144_v21 = vmax.f32 %v142_v1, %v143_v11 }
 0x118   :  { %v151_v2 = vmax.f32 %v149_v52, %v150_v61  ;;  %v264_v25 = vmax.f32 %v262_v6, %v263_v16 }
 0x119   :  { %v405_v4 = vrot.slane %v404_v63, 2  ;;  %v413_v5 = vrot.slane %v412_v0, 2  ;;  %v271_v8 = vmax.f32 %v269_v62, %v270_v3 }
 0x11a   :  { %v152_v7 = vrot.slane %v151_v2, 2 }
 0x11b   :  { %v406_v9 = vmax.f32 %v404_v63, %v405_v4  ;;  %v414_v10 = vmax.f32 %v412_v0, %v413_v5  ;;  %v272_v13 = vrot.slane %v271_v8, 2 }
 0x11c   :  { %v153_v12 = vmax.f32 %v151_v2, %v152_v7 }
 0x11d   :  { %v407_v14 = vrot.slane %v406_v9, 1  ;;  %v415_v15 = vrot.slane %v414_v10, 1  ;;  %v273_v18 = vmax.f32 %v271_v8, %v272_v13 }
 0x11e   :  { %v154_v17 = vrot.slane %v153_v12, 1 }
 0x11f   :  { %v408_v19 = vmax.f32 %v406_v9, %v407_v14  ;;  %v416_v20 = vmax.f32 %v414_v10, %v415_v15  ;;  %v274_v22 = vrot.slane %v273_v18, 1 }
 0x120   :  { %v155_v23 = vmax.f32 %v153_v12, %v154_v17 }
 0x121   :  { %v417_v24 = vsel %vm156_vm10, %v408_v19, %v416_v20  ;;  %v275_v28 = vmax.f32 %v273_v18, %v274_v22 }
 0x122   :  { %v420_v26 = vpack.c.bf16 %v417_v24, %v417_v24  ;;  %v157_v27 = vsel %vm156_vm10, %v144_v21, %v155_v23 }
 0x123   :  { %v418_v29 = vpack.c.bf16 %v157_v27, %v157_v27  ;;  %v276_v30 = vsel %vm156_vm10, %v264_v25, %v275_v28 }
 0x124   :  { %651 = vmatmul.bf16.vlgmr.msrb.gmra.mxu1 %v420_v26  ;;  %v419_v31 = vpack.c.bf16 %v276_v30, %v276_v30 }
 0x125   :  { %625 = vmatmul.bf16.vlgmr.msrb.gmra.mxu3 %v418_v29 }
 0x126   :  { %638 = vmatmul.bf16.vlgmr.msrb.gmra.mxu0 %v419_v31 }
 0x1a1   :  { %v652_v32 = vpop.f32.mrf.mxu1 }
 0x1a3   :  { %v639_v33 = vpop.f32.mrf.mxu0 }
 0x1a8   :  { %v626_v35 = vpop.f32.mrf.mxu3 }
 0x1a9   :  { %v627_v36 = vadd.f32 %v926_v34, %v626_v35  ;;  %v654_v37 = vpop.f32.mrf.mxu1 }
 0x1ab   :  { %v640_v38 = vadd.f32 %v639_v33, %v627_v36  ;;  %v641_v39 = vpop.f32.mrf.mxu0 }
 0x1ad   :  { %v653_v40 = vadd.f32 %v652_v32, %v640_v38 }
 0x1af   :  { %656 = vst [vmem:[%s1179_s9] sm:$0x3] %v653_v40 }
 0x1b0   :  { %v628_v41 = vpop.f32.mrf.mxu3 }

// kernel: _lambda_.2
= control target key start
LH: loop header
LB: loop body
LE: loop exit
PB: predicated region body
PF: predicated region fallthrough
CT: control target
= control target key end

     0   :  { %s2135_s0 = inlined_call_operand.vmem [shape: f32[16,32], index: 0, kind: input, shape index: {}]   ;;  %s2136_s1 = inlined_call_operand.vmem [shape: f32[2,32], index: 1, kind: input, shape index: {}]   ;;  %s2137_s2 = inlined_call_operand.vmem [shape: f32[32,32], index: 2, kind: input, shape index: {}, may-alias: {2,3}]   ;;  %s2138_s3 = inlined_call_operand.vmem [shape: f32[32,32], index: 3, kind: input, shape index: {}, may-alias: {2,3}]   ;;  %s2139_s4 = inlined_call_operand.vmem [shape: bf16[2,32,96], index: 4, kind: input, shape index: {}]   ;;  %s2140_s5 = inlined_call_operand.vmem [shape: f32[2,1,96], index: 5, kind: input, shape index: {}]   ;;  %s2141_s6 = inlined_call_operand.hbm [shape: bf16[2,32,32], index: 6, kind: input, shape index: {}]   ;;  %s2142_s7 = inlined_call_operand.vmem [shape: f32[2,1,32], index: 7, kind: input, shape index: {}, may-alias: {7,9,13,15}]   ;;  %s2143_s8 = inlined_call_operand.vmem [shape: f32[2,1,32], index: 8, kind: input, shape index: {}, may-alias: {8,14}]   ;;  %s2144_s9 = inlined_call_operand.vmem [shape: f32[2,1,32], index: 9, kind: input, shape index: {}, may-alias: {7,9,13,15}]   ;;  %s2145_s10 = inlined_call_operand.hbm [shape: bf16[2,32,128], index: 10, kind: input, shape index: {}]   ;;  %s2146_s11 = inlined_call_operand.vmem [shape: f32[2,1,128], index: 11, kind: input, shape index: {}]   ;;  %s2147_s12 = inlined_call_operand.vmem [shape: bf16[2,128,32], index: 12, kind: input, shape index: {}]   ;;  %s2148_s13 = inlined_call_operand.vmem [shape: f32[2,1,32], index: 13, kind: input, shape index: {}, may-alias: {7,9,13,15}]   ;;  %s2149_s14 = inlined_call_operand.vmem [shape: f32[2,1,32], index: 14, kind: input, shape index: {}, may-alias: {8,14}]   ;;  %s2150_s15 = inlined_call_operand.vmem [shape: f32[2,1,32], index: 15, kind: input, shape index: {}, may-alias: {7,9,13,15}]   ;;  %s2151_s16 = inlined_call_operand.vmem [shape: f32[16,32], index: 16, kind: output, shape index: {}]  }
   0x1   :  { %2153 = sst [smem:[#allocation8_spill]] %s2135_s0 }
   0x2   :  { %21 = vsyncpa [#allocation3], 0  ;;  %s39_s23 = sshll.u32 %s2141_s6, 4  ;;  %s40_s23 = int_to_ptr.hbm [resolvable:$true] %s39_s23 }
   0x3   :  { %22 = vsyncpa [#allocation5], 0  ;;  %s1663_s24 = smov [#allocation2]   ;;  %s58_s28 = sshll.u32 %s2145_s10, 4  ;;  %s59_s28 = int_to_ptr.hbm [resolvable:$true] %s58_s28 }
   0x4   :  { %s41_s25 = sshll.u32 %s1663_s24, 4  ;;  %s1664_s29 = smov 64   ;;  %s42_s25 = int_to_ptr.vmem [resolvable:$true] %s41_s25 }
   0x5   :  { %s1665_s30 = smov 4   ;;  %s1666_s0 = smov [#allocation4]  }
   0x6   :  { %47 = dma.hbm_to_vmem [thread:$0]  %s40_s23, 512, %s42_s25, [#allocation3], %s1664_s29, %s1664_s29, %s1665_s30  }
   0x7   :  { %s60_s17 = sshll.u32 %s1666_s0, 4  ;;  %s61_s17 = int_to_ptr.vmem [resolvable:$true] %s60_s17 }
   0x8   :  { %66 = dma.hbm_to_vmem [thread:$0]  %s59_s28, 512, %s61_s17, [#allocation5], %s1664_s29, %s1664_s29, %s1665_s30  }
   0x9   :  { %1659 = dma.done.wait [#allocation3], 512  }
   0xa   :  { %1660 = vsyncadd [#allocation3], 4294966784 }
   0xb   :  { %1661 = dma.done.wait [#allocation5], 512  }
   0xc   :  { %1662 = vsyncadd [#allocation5], 4294966784  ;;  %v1477_v0 = vld [vmem:[%s2139_s4 + $0x8] sm:$0xff]  ;;  %v1476_v1 = vld [vmem:[%s2139_s4] sm:$0xff]  ;;  %s2154_s26 = sld [smem:[#allocation8_spill]]  ;;  %vm117_vm0 = vcmask 261120  }
   0xd   :  { %v91_v2 = vld [vmem:[%s2137_s2 + $0x18] sm:$0xff]  ;;  %v89_v3 = vld [vmem:[%s2137_s2 + $0x8] sm:$0xff]  ;;  %127 = vmatpush.bf16.msra.mxu0 %v1477_v0  ;;  %s1667_s30 = smov 32   ;;  %v90_v7 = vld [vmem:[%s2137_s2 + $0x10] sm:$0xff]  ;;  %s1668_s20 = smov 96  }
   0xe   :  { %145 = vrot.lane.b32.xlu0 %v91_v2, %s1667_s30  ;;  %141 = vrot.lane.b32.xlu1 %v89_v3, %s1667_s30  ;;  %v88_v8 = vld [vmem:[%s2137_s2] sm:$0xff]  ;;  %v1885_v0 = vld [vmem:[%s2138_s3 + $0x18] sm:$0xff] }
   0xf   :  { %v1551_v9 = vld [vmem:[%s2140_s5] ss:$0 sm:$0xff]  ;;  %v1868_v54 = vld [vmem:[%s2136_s1 + $0x1] ss:$0 sm:$0xff]  ;;  %237 = vmatpush.msra.mxu2 %v1885_v0 }
  0x10   :  { %v1861_v50 = vld [vmem:[%s2136_s1] ss:$0 sm:$0xff] }
  0x11   :  { %128 = vmatpush.bf16.msra.mxu0 %v1476_v1  ;;  %v1890_v1 = vld [vmem:[%s2138_s3 + $0x10] sm:$0xff] }
  0x12   :  { %v1780_v4 = vld [vmem:[%s2154_s26] sm:$0xff]  ;;  %v1785_v5 = vld [vmem:[%s2154_s26 + $0x8] sm:$0xff]  ;;  %238 = vmatpush.msra.mxu2 %v1890_v1 }
  0x13   :  { %v96_v6 = vpack.c.bf16 %v1785_v5, %v1780_v4 }
  0x15   :  { %1310 = vmatmul.msk.bf16.vlgmr.msra.gmra.mxu0 %vm117_vm0, %v96_v6 }
  0x16   :  { %143 = vrot.lane.b32.xlu0 %v90_v7, %s1667_s30  ;;  %139 = vrot.lane.b32.xlu1 %v88_v8, %s1667_s30 }
  0x80   :  { %v1799_v10 = vpop.permute.xlu0 %145  ;;  %v1801_v13 = vpop.permute.xlu1 %141 }
  0x88   :  { %v1807_v16 = vpop.permute.xlu0 %143  ;;  %v1819_v22 = vpop.permute.xlu1 %139 }
  0x92   :  { %v130_v11 = vpop.f32.mrf.mxu0 }
  0x93   :  { %v131_v12 = vadd.f32 %v1551_v9, %v130_v11 }
  0x95   :  { %v154_v14 = vmul.f32 %v1799_v10, %v131_v12  ;;  %v152_v15 = vmul.f32 %v1801_v13, %v131_v12  ;;  %v153_v20 = vmul.f32 %v1807_v16, %v131_v12  ;;  %v151_v24 = vmul.f32 %v1819_v22, %v131_v12 }
  0x97   :  { %183 = vrot.lane.b32.xlu2 %v154_v14, %s1668_s20  ;;  %179 = vrot.lane.b32.xlu0 %v152_v15, %s1668_s20 }
  0x9a   :  { %v132_v17 = vpop.f32.mrf.mxu0 }
  0x9b   :  { %v1809_v18 = vadd.f32 %v1551_v9, %v132_v17 }
  0x9d   :  { %v289_v19 = vmul.f32 %v1799_v10, %v1809_v18  ;;  %v288_v21 = vmul.f32 %v1807_v16, %v1809_v18  ;;  %v287_v23 = vmul.f32 %v1801_v13, %v1809_v18  ;;  %v286_v25 = vmul.f32 %v1819_v22, %v1809_v18 }
  0x9f   :  { %306 = vrot.lane.b32.xlu1 %v289_v19, %s1668_s20  ;;  %181 = vrot.lane.b32.xlu2 %v153_v20, %s1668_s20 }
  0xa0   :  { %304 = vrot.lane.b32.xlu0 %v288_v21, %s1668_s20 }
  0xa7   :  { %302 = vrot.lane.b32.xlu1 %v287_v23, %s1668_s20  ;;  %177 = vrot.lane.b32.xlu2 %v151_v24, %s1668_s20 }
  0xaf   :  { %300 = vrot.lane.b32.xlu2 %v286_v25, %s1668_s20 }
  0xb7   :  { %161 = vrot.lane.b32.xlu2 %v91_v2, %s1664_s29  ;;  %v1896_v2 = vld [vmem:[%s2138_s3 + $0x8] sm:$0xff] }
  0xb8   :  { %239 = vmatpush.msra.mxu2 %v1896_v2 }
  0xbf   :  { %159 = vrot.lane.b32.xlu2 %v90_v7, %s1664_s29 }
  0xc7   :  { %157 = vrot.lane.b32.xlu2 %v89_v3, %s1664_s29  ;;  %v1902_v3 = vld [vmem:[%s2138_s3] sm:$0xff] }
  0xc8   :  { %240 = vmatpush.msra.mxu2 %v1902_v3 }
  0xca   :  { %360 = vmatpush.msrb.mxu2 %v1885_v0 }
  0xcc   :  { %361 = vmatpush.msrb.mxu2 %v1890_v1 }
  0xce   :  { %362 = vmatpush.msrb.mxu2 %v1896_v2 }
  0xcf   :  { %155 = vrot.lane.b32.xlu2 %v88_v8, %s1664_s29 }
  0xd0   :  { %363 = vmatpush.msrb.mxu2 %v1902_v3 }
  0xf1   :  { %v184_v26 = vpop.permute.xlu2 %183 }
  0xf2   :  { %1311 = vmatpush.xpose.msk.msra.mxu1 %vm117_vm0, %v184_v26 }
  0xf9   :  { %v182_v27 = vpop.permute.xlu2 %181 }
  0xfa   :  { %1312 = vmatpush.xpose.msk.msra.mxu1 %vm117_vm0, %v182_v27 }
 0x101   :  { %v178_v28 = vpop.permute.xlu2 %177 }
 0x109   :  { %v180_v29 = vpop.permute.xlu0 %179  ;;  %v301_v30 = vpop.permute.xlu2 %300 }
 0x10a   :  { %1313 = vmatpush.xpose.msk.msra.mxu1 %vm117_vm0, %v180_v29 }
 0x10e   :  { %1314 = vmatpush.xpose.msk.msra.mxu1 %vm117_vm0, %v178_v28 }
 0x111   :  { %v307_v31 = vpop.permute.xlu1 %306  ;;  %1315 = vmatmul.msk.f32.vlgmr.msra.gmra.mxu1 %vm117_vm0, %v131_v12  ;;  %v1838_v32 = vpop.permute.xlu2 %161 }
 0x112   :  { %1318 = vmatpush.xpose.msk.msrb.mxu0 %vm117_vm0, %v307_v31  ;;  %v305_v33 = vpop.permute.xlu0 %304  ;;  %v170_v37 = vmul.f32 %v1838_v32, %v131_v12  ;;  %v293_v59 = vmul.f32 %v1838_v32, %v1809_v18  ;;  %v1478_v31 = vld [vmem:[#allocation2] sm:$0xff] }
 0x116   :  { %1319 = vmatpush.xpose.msk.msrb.mxu0 %vm117_vm0, %v305_v33 }
 0x119   :  { %v303_v34 = vpop.permute.xlu1 %302  ;;  %v1842_v35 = vpop.permute.xlu2 %159 }
 0x11a   :  { %1320 = vmatpush.xpose.msk.msrb.mxu0 %vm117_vm0, %v303_v34  ;;  %v169_v36 = vmul.f32 %v1842_v35, %v131_v12  ;;  %v292_v57 = vmul.f32 %v1842_v35, %v1809_v18 }
 0x11c   :  { %v1511_v38 = vpack.i.bf16 %v169_v36, %v170_v37  ;;  %v1521_v60 = vpack.i.bf16 %v292_v57, %v293_v59  ;;  %v1554_v37 = vld [vmem:[%s2142_s7] ss:$0 sm:$0xff] }
 0x11e   :  { %1321 = vmatpush.xpose.msk.msrb.mxu0 %vm117_vm0, %v301_v30  ;;  %1512 = vrot.lane.b32.xlu2 %v1511_v38, %s1664_s29  ;;  %v1479_v30 = vld [vmem:[#allocation2 + $0x8] sm:$0xff] }
 0x121   :  { %1322 = vmatmul.msk.f32.vlgmr.msrb.gmra.mxu0 %vm117_vm0, %v1809_v18  ;;  %v1851_v39 = vpop.permute.xlu2 %157 }
 0x122   :  { %v168_v42 = vmul.f32 %v1851_v39, %v131_v12  ;;  %v291_v62 = vmul.f32 %v1851_v39, %v1809_v18 }
 0x129   :  { %v1853_v40 = vpop.permute.xlu2 %155 }
 0x12a   :  { %v167_v41 = vmul.f32 %v1853_v40, %v131_v12  ;;  %v290_v61 = vmul.f32 %v1853_v40, %v1809_v18 }
 0x12c   :  { %v1516_v43 = vpack.i.bf16 %v167_v41, %v168_v42  ;;  %v1526_v63 = vpack.i.bf16 %v290_v61, %v291_v62 }
 0x12e   :  { %1517 = vrot.lane.b32.xlu2 %v1516_v43, %s1664_s29 }
 0x178   :  { %v1513_v44 = vpop.permute.xlu2 %1512 }
 0x179   :  { %v1514_v45 = vunpack.i.l.bf16 %v1513_v44  ;;  %v1515_v46 = vunpack.i.h.bf16 %v1513_v44 }
 0x17b   :  { %278 = vmatpush.msrb.mxu1 %v1514_v45 }
 0x17d   :  { %279 = vmatpush.msrb.mxu1 %v1515_v46 }
 0x188   :  { %v1518_v47 = vpop.permute.xlu2 %1517 }
 0x189   :  { %v1519_v48 = vunpack.i.l.bf16 %v1518_v47  ;;  %v1520_v49 = vunpack.i.h.bf16 %v1518_v47 }
 0x18b   :  { %280 = vmatpush.msrb.mxu1 %v1519_v48  ;;  %v1669_v48 = vmov 32.0  }
 0x18d   :  { %281 = vmatpush.msrb.mxu1 %v1520_v49 }
 0x18e   :  { %v213_v51 = vpop.f32.mrf.mxu1 }
 0x18f   :  { %v214_v52 = vadd.f32 %v1861_v50, %v213_v51 }
 0x191   :  { %v216_v53 = vsel %vm117_vm0, %v214_v52, -inf }
 0x192   :  { %217 = vmax.xlane.f32.xlu0 %v216_v53 }
 0x19e   :  { %v336_v55 = vpop.f32.mrf.mxu0 }
 0x19f   :  { %v337_v56 = vadd.f32 %v1868_v54, %v336_v55 }
 0x1a1   :  { %v339_v58 = vsel %vm117_vm0, %v337_v56, -inf }
 0x1a2   :  { %340 = vmax.xlane.f32.xlu1 %v339_v58 }
 0x1a6   :  { %1522 = vrot.lane.b32.xlu0 %v1521_v60, %s1664_s29 }
 0x1bb   :  { %1527 = vrot.lane.b32.xlu1 %v1526_v63, %s1664_s29 }
 0x205   :  { %v218_v6 = vpop.xlane.xlu0 %217 }
 0x206   :  { %v219_v7 = vsub.f32 %v214_v52, %v218_v6 }
 0x208   :  { %v220_v8 = vmul.f32 1.442695, %v219_v7  ;;  %v1481_v7 = vld [vmem:[#allocation4 + $0x8] sm:$0xff] }
 0x20a   :  { %1569 = vpow2.f32 %v220_v8 }
 0x210   :  { %v1570_v9 = vpop.eup %1569 }
 0x211   :  { %1316 = vmatmul.msk.f32.vlgmr.msra.gmra.mxu2 %vm117_vm0, %v1570_v9 }
 0x212   :  { %542 = vmatpush.bf16.msra.mxu2 %v1481_v7 }
 0x215   :  { %v341_v11 = vpop.xlane.xlu1 %340 }
 0x216   :  { %v342_v12 = vsub.f32 %v337_v56, %v341_v11 }
 0x218   :  { %v343_v14 = vmul.f32 1.442695, %v342_v12  ;;  %v1523_v15 = vpop.permute.xlu0 %1522  ;;  %v1480_v12 = vld [vmem:[#allocation4] sm:$0xff] }
 0x219   :  { %v1524_v17 = vunpack.i.l.bf16 %v1523_v15  ;;  %v1525_v18 = vunpack.i.h.bf16 %v1523_v15  ;;  %543 = vmatpush.bf16.msra.mxu2 %v1480_v12 }
 0x21a   :  { %1571 = vpow2.f32 %v343_v14 }
 0x21b   :  { %401 = vmatpush.msra.mxu1 %v1524_v17 }
 0x21d   :  { %402 = vmatpush.msra.mxu1 %v1525_v18 }
 0x220   :  { %v1572_v19 = vpop.eup %1571 }
 0x221   :  { %1323 = vmatmul.msk.f32.vlgmr.msrb.gmra.mxu2 %vm117_vm0, %v1572_v19 }
 0x222   :  { %821 = vmatpush.msrb.mxu2 %v1885_v0 }
 0x224   :  { %822 = vmatpush.msrb.mxu2 %v1890_v1 }
 0x226   :  { %823 = vmatpush.msrb.mxu2 %v1896_v2 }
 0x228   :  { %824 = vmatpush.msrb.mxu2 %v1902_v3 }
 0x22d   :  { %v1528_v20 = vpop.permute.xlu1 %1527 }
 0x22e   :  { %v1529_v21 = vunpack.i.l.bf16 %v1528_v20  ;;  %v1530_v23 = vunpack.i.h.bf16 %v1528_v20 }
 0x230   :  { %403 = vmatpush.msra.mxu1 %v1529_v21 }
 0x232   :  { %404 = vmatpush.msra.mxu1 %v1530_v23 }
 0x294   :  { %v242_v24 = vpop.f32.mrf.mxu2 }
 0x295   :  { %1573 = vrcp.f32 %v242_v24 }
 0x29b   :  { %v1574_v25 = vpop.eup %1573 }
 0x29c   :  { %v246_v26 = vmul.f32 %v1574_v25, %v1570_v9 }
 0x29e   :  { %1317 = vmatmul.msk.f32.vlgmr.msrb.gmra.mxu1 %vm117_vm0, %v246_v26 }
 0x29f   :  { %439 = vmatpush.bf16.msrb.mxu1 %v1479_v30 }
 0x2a3   :  { %440 = vmatpush.bf16.msrb.mxu1 %v1478_v31  ;;  %v1555_v31 = vld [vmem:[%s2143_s8] ss:$0 sm:$0xff] }
 0x2a4   :  { %v365_v27 = vpop.f32.mrf.mxu2 }
 0x2a5   :  { %1575 = vrcp.f32 %v365_v27 }
 0x2a6   :  { %1577 = vrcp.f32 %v1669_v48  ;;  %v1483_v48 = vld [vmem:[%s2147_s12 + $0x8] sm:$0xff] }
 0x2ab   :  { %v1576_v28 = vpop.eup %1575 }
 0x2ac   :  { %v369_v29 = vmul.f32 %v1576_v28, %v1572_v19  ;;  %v1578_v49 = vpop.eup %1577 }
 0x2ad   :  { %v458_v51 = vmul.f32 32.0, %v1578_v49  ;;  %vm462_vm1 = vweird.f32 %v1578_v49 }
 0x2ae   :  { %1324 = vmatmul.msk.f32.vlgmr.msra.gmra.mxu1 %vm117_vm0, %v369_v29 }
 0x2af   :  { %v459_v52 = vsub.f32 1.0, %v458_v51  ;;  %v1557_v51 = vld [vmem:[%s2146_s11] ss:$0 sm:$0xff] }
 0x2b1   :  { %v460_v53 = vmul.f32 %v1578_v49, %v459_v52 }
 0x2b3   :  { %v461_v55 = vadd.f32 %v1578_v49, %v460_v53 }
 0x2b5   :  { %v1922_v56 = vsel %vm462_vm1, %v1578_v49, %v461_v55  ;;  %v1482_v49 = vld [vmem:[%s2147_s12] sm:$0xff] }
 0x31b   :  { %v283_v33 = vpop.f32.mrf.mxu1 }
 0x32b   :  { %v406_v34 = vpop.f32.mrf.mxu1 }
 0x32c   :  { %v409_v36 = vpack.c.bf16 %v406_v34, %v283_v33 }
 0x32e   :  { %1333 = vmatmul.msk.bf16.vlgmr.msrb.gmra.mxu1 %vm117_vm0, %v409_v36 }
 0x3ab   :  { %v442_v38 = vpop.f32.mrf.mxu1 }
 0x3ac   :  { %v443_v41 = vadd.f32 %v1554_v37, %v442_v38 }
 0x3ae   :  { %v447_v42 = vadd.f32 %v443_v41, %v1780_v4 }
 0x3b0   :  { %v451_v43 = vsel %vm117_vm0, %v447_v42, 0.0 }
 0x3b1   :  { %452 = vadd.xlane.f32.xlu2 %v451_v43 }
 0x3b3   :  { %v444_v44 = vpop.f32.mrf.mxu1 }
 0x3b4   :  { %v445_v45 = vadd.f32 %v1554_v37, %v444_v44  ;;  %v1556_v37 = vld [vmem:[%s2144_s9] ss:$0 sm:$0xff] }
 0x3b6   :  { %v448_v46 = vadd.f32 %v445_v45, %v1785_v5 }
 0x3b8   :  { %v454_v47 = vsel %vm117_vm0, %v448_v46, 0.0 }
 0x3b9   :  { %455 = vadd.xlane.f32.xlu0 %v454_v47  ;;  %v1488_v47 = vld [vmem:[%s2147_s12 + $0x30] sm:$0xff] }
 0x424   :  { %v453_v4 = vpop.xlane.xlu2 %452 }
 0x425   :  { %v464_v57 = vmul.f32 %v1922_v56, %v453_v4 }
 0x427   :  { %v466_v58 = vsub.f32 %v447_v42, %v464_v57 }
 0x429   :  { %v468_v59 = vmul.f32 %v466_v58, %v466_v58 }
 0x42b   :  { %v470_v5 = vsel %vm117_vm0, %v468_v59, 0.0 }
 0x42c   :  { %v456_v60 = vpop.xlane.xlu0 %455  ;;  %471 = vadd.xlane.f32.xlu1 %v470_v5 }
 0x42d   :  { %v465_v61 = vmul.f32 %v1922_v56, %v456_v60 }
 0x42f   :  { %v467_v62 = vsub.f32 %v448_v46, %v465_v61  ;;  %v1489_v46 = vld [vmem:[%s2147_s12 + $0x38] sm:$0xff] }
 0x430   :  { %637 = vmatpush.bf16.msra.mxu3 %v1489_v46 }
 0x431   :  { %v469_v63 = vmul.f32 %v467_v62, %v467_v62 }
 0x433   :  { %v473_v6 = vsel %vm117_vm0, %v469_v63, 0.0 }
 0x434   :  { %474 = vadd.xlane.f32.xlu2 %v473_v6  ;;  %638 = vmatpush.bf16.msra.mxu3 %v1488_v47 }
 0x49f   :  { %v472_v8 = vpop.xlane.xlu1 %471 }
 0x4a0   :  { %v476_v9 = vmul.f32 %v472_v8, %v1922_v56 }
 0x4a2   :  { %v478_v11 = vadd.f32 1e-12, %v476_v9 }
 0x4a4   :  { %1579 = vrsqrt.f32 %v478_v11  ;;  %vm486_vm3 = vweird.f32 %v478_v11 }
 0x4a7   :  { %v475_v14 = vpop.xlane.xlu2 %474 }
 0x4a8   :  { %v477_v15 = vmul.f32 %v475_v14, %v1922_v56 }
 0x4aa   :  { %v1580_v17 = vpop.eup %1579  ;;  %v479_v18 = vadd.f32 1e-12, %v477_v15 }
 0x4ab   :  { %v481_v19 = vmul.f32 %v1580_v17, %v478_v11  ;;  %vm487_vm2 = vweird.f32 %v1580_v17 }
 0x4ac   :  { %1581 = vrsqrt.f32 %v479_v18  ;;  %vm488_vm4 = vmor %vm486_vm3, %vm487_vm2  ;;  %vm496_vm6 = vweird.f32 %v479_v18 }
 0x4ad   :  { %v482_v20 = vmul.f32 %v1580_v17, %v481_v19 }
 0x4af   :  { %v483_v21 = vmul.f32 0.5, %v482_v20  ;;  %v1558_v20 = vld [vmem:[%s2148_s13] ss:$0 sm:$0xff] }
 0x4b1   :  { %v484_v23 = vsub.f32 1.5, %v483_v21 }
 0x4b2   :  { %v1582_v24 = vpop.eup %1581 }
 0x4b3   :  { %v485_v25 = vmul.f32 %v1580_v17, %v484_v23  ;;  %v491_v26 = vmul.f32 %v1582_v24, %v479_v18  ;;  %vm497_vm5 = vweird.f32 %v1582_v24 }
 0x4b4   :  { %vm498_vm7 = vmor %vm496_vm6, %vm497_vm5 }
 0x4b5   :  { %v492_v27 = vmul.f32 %v1582_v24, %v491_v26  ;;  %v489_v28 = vsel %vm488_vm4, %v1580_v17, %v485_v25 }
 0x4b6   :  { %v500_v33 = vmul.f32 %v489_v28, %v466_v58 }
 0x4b7   :  { %v493_v29 = vmul.f32 0.5, %v492_v27 }
 0x4b8   :  { %v505_v38 = vmul.f32 %v1555_v31, %v500_v33 }
 0x4b9   :  { %v494_v30 = vsub.f32 1.5, %v493_v29 }
 0x4ba   :  { %v510_v43 = vadd.f32 %v1556_v37, %v505_v38 }
 0x4bb   :  { %v495_v34 = vmul.f32 %v1582_v24, %v494_v30 }
 0x4bd   :  { %v499_v36 = vsel %vm498_vm7, %v1582_v24, %v495_v34 }
 0x4be   :  { %v501_v41 = vmul.f32 %v499_v36, %v467_v62 }
 0x4c0   :  { %v506_v42 = vmul.f32 %v1555_v31, %v501_v41 }
 0x4c2   :  { %v511_v44 = vadd.f32 %v1556_v37, %v506_v42 }
 0x4c4   :  { %v512_v45 = vpack.c.bf16 %v511_v44, %v510_v43 }
 0x4c6   :  { %1342 = vmatmul.msk.bf16.vlgmr.msra.gmra.mxu2 %vm117_vm0, %v512_v45 }
 0x4c7   :  { %942 = vmatpush.msra.mxu2 %v1885_v0  ;;  %v1487_v0 = vld [vmem:[%s2147_s12 + $0x28] sm:$0xff] }
 0x4c8   :  { %639 = vmatpush.bf16.msra.mxu3 %v1487_v0  ;;  %v1490_v0 = vld [vmem:[%s2139_s4 + $0x10] sm:$0xff] }
 0x4c9   :  { %943 = vmatpush.msra.mxu2 %v1890_v1  ;;  %v1486_v1 = vld [vmem:[%s2147_s12 + $0x20] sm:$0xff] }
 0x4cb   :  { %944 = vmatpush.msra.mxu2 %v1896_v2  ;;  %v1485_v2 = vld [vmem:[%s2147_s12 + $0x18] sm:$0xff] }
 0x4cc   :  { %640 = vmatpush.bf16.msra.mxu3 %v1486_v1 }
 0x4cd   :  { %945 = vmatpush.msra.mxu2 %v1902_v3  ;;  %v1484_v3 = vld [vmem:[%s2147_s12 + $0x10] sm:$0xff] }
 0x4d0   :  { %641 = vmatpush.bf16.msra.mxu3 %v1485_v2 }
 0x4d4   :  { %642 = vmatpush.bf16.msra.mxu3 %v1484_v3 }
 0x4d8   :  { %643 = vmatpush.bf16.msra.mxu3 %v1483_v48 }
 0x4dc   :  { %644 = vmatpush.bf16.msra.mxu3 %v1482_v49 }
 0x549   :  { %v545_v52 = vpop.f32.mrf.mxu2 }
 0x54a   :  { %v546_v53 = vadd.f32 %v1557_v51, %v545_v52 }
 0x54c   :  { %v552_v55 = vmul.f32 0.044715, %v546_v53  ;;  %v550_v12 = vmul.f32 0.5, %v546_v53 }
 0x54e   :  { %v554_v4 = vmul.f32 %v552_v55, %v546_v53 }
 0x550   :  { %v556_v57 = vmul.f32 %v554_v4, %v546_v53 }
 0x551   :  { %v547_v58 = vpop.f32.mrf.mxu2 }
 0x552   :  { %v548_v59 = vadd.f32 %v1557_v51, %v547_v58  ;;  %v558_v5 = vadd.f32 %v556_v57, %v546_v53 }
 0x554   :  { %v553_v60 = vmul.f32 0.044715, %v548_v59  ;;  %v560_v62 = vmul.f32 0.7978846, %v558_v5  ;;  %v551_v14 = vmul.f32 0.5, %v548_v59 }
 0x556   :  { %v555_v61 = vmul.f32 %v553_v60, %v548_v59  ;;  %1583 = vtanh.f32 %v560_v62 }
 0x558   :  { %v557_v63 = vmul.f32 %v555_v61, %v548_v59  ;;  %v1559_v61 = vld [vmem:[%s2149_s14] ss:$0 sm:$0xff] }
 0x55a   :  { %v559_v6 = vadd.f32 %v557_v63, %v548_v59 }
 0x55c   :  { %v561_v7 = vmul.f32 0.7978846, %v559_v6  ;;  %v1584_v8 = vpop.eup %1583 }
 0x55d   :  { %v564_v9 = vadd.f32 1.0, %v1584_v8 }
 0x55e   :  { %1585 = vtanh.f32 %v561_v7  ;;  %v1560_v7 = vld [vmem:[%s2150_s15] ss:$0 sm:$0xff] }
 0x55f   :  { %v566_v17 = vmul.f32 %v564_v9, %v550_v12 }
 0x564   :  { %v1586_v11 = vpop.eup %1585 }
 0x565   :  { %v565_v15 = vadd.f32 1.0, %v1586_v11 }
 0x567   :  { %v567_v18 = vmul.f32 %v565_v15, %v551_v14 }
 0x569   :  { %v568_v19 = vpack.c.bf16 %v567_v18, %v566_v17  ;;  %v1561_v17 = vld [vmem:[%s2140_s5 + $0x1] ss:$0 sm:$0xff] }
 0x56b   :  { %645 = vmatmul.bf16.vlgmr.msra.gmra.mxu3 %v568_v19 }
 0x5ee   :  { %v646_v21 = vpop.f32.mrf.mxu3 }
 0x5ef   :  { %v647_v23 = vadd.f32 %v1558_v20, %v646_v21 }
 0x5f1   :  { %v651_v24 = vadd.f32 %v647_v23, %v510_v43 }
 0x5f3   :  { %v655_v25 = vsel %vm117_vm0, %v651_v24, 0.0 }
 0x5f4   :  { %656 = vadd.xlane.f32.xlu2 %v655_v25 }
 0x5f6   :  { %v648_v26 = vpop.f32.mrf.mxu3 }
 0x5f7   :  { %v649_v27 = vadd.f32 %v1558_v20, %v648_v26 }
 0x5f9   :  { %v652_v28 = vadd.f32 %v649_v27, %v511_v44  ;;  %v1491_v44 = vld [vmem:[%s2139_s4 + $0x18] sm:$0xff] }
 0x5fa   :  { %741 = vmatpush.bf16.msra.mxu0 %v1491_v44 }
 0x5fb   :  { %v658_v29 = vsel %vm117_vm0, %v652_v28, 0.0 }
 0x5fc   :  { %659 = vadd.xlane.f32.xlu0 %v658_v29 }
 0x5fe   :  { %742 = vmatpush.bf16.msra.mxu0 %v1490_v0 }
 0x667   :  { %v657_v30 = vpop.xlane.xlu2 %656 }
 0x668   :  { %v661_v31 = vmul.f32 %v657_v30, %v1922_v56 }
 0x66a   :  { %v663_v33 = vsub.f32 %v651_v24, %v661_v31 }
 0x66c   :  { %v665_v34 = vmul.f32 %v663_v33, %v663_v33 }
 0x66e   :  { %v667_v36 = vsel %vm117_vm0, %v665_v34, 0.0 }
 0x66f   :  { %v660_v37 = vpop.xlane.xlu0 %659  ;;  %668 = vadd.xlane.f32.xlu2 %v667_v36 }
 0x670   :  { %v662_v38 = vmul.f32 %v660_v37, %v1922_v56 }
 0x672   :  { %v664_v41 = vsub.f32 %v652_v28, %v662_v38 }
 0x674   :  { %v666_v42 = vmul.f32 %v664_v41, %v664_v41 }
 0x676   :  { %v670_v43 = vsel %vm117_vm0, %v666_v42, 0.0 }
 0x677   :  { %671 = vadd.xlane.f32.xlu1 %v670_v43 }
 0x6e2   :  { %v669_v45 = vpop.xlane.xlu2 %668 }
 0x6e3   :  { %v673_v46 = vmul.f32 %v669_v45, %v1922_v56 }
 0x6e5   :  { %v675_v47 = vadd.f32 1e-12, %v673_v46 }
 0x6e7   :  { %1587 = vrsqrt.f32 %v675_v47  ;;  %vm683_vm9 = vweird.f32 %v675_v47 }
 0x6ea   :  { %v672_v1 = vpop.xlane.xlu1 %671 }
 0x6eb   :  { %v674_v2 = vmul.f32 %v672_v1, %v1922_v56 }
 0x6ed   :  { %v1588_v3 = vpop.eup %1587  ;;  %v676_v48 = vadd.f32 1e-12, %v674_v2 }
 0x6ee   :  { %v678_v49 = vmul.f32 %v1588_v3, %v675_v47  ;;  %vm684_vm8 = vweird.f32 %v1588_v3 }
 0x6ef   :  { %1589 = vrsqrt.f32 %v676_v48  ;;  %vm685_vm10 = vmor %vm683_vm9, %vm684_vm8  ;;  %vm693_vm12 = vweird.f32 %v676_v48 }
 0x6f0   :  { %v679_v51 = vmul.f32 %v1588_v3, %v678_v49 }
 0x6f2   :  { %v680_v52 = vmul.f32 0.5, %v679_v51 }
 0x6f4   :  { %v681_v53 = vsub.f32 1.5, %v680_v52 }
 0x6f5   :  { %v1590_v55 = vpop.eup %1589 }
 0x6f6   :  { %v682_v4 = vmul.f32 %v1588_v3, %v681_v53  ;;  %v688_v57 = vmul.f32 %v1590_v55, %v676_v48  ;;  %vm694_vm11 = vweird.f32 %v1590_v55 }
 0x6f7   :  { %vm695_vm13 = vmor %vm693_vm12, %vm694_vm11 }
 0x6f8   :  { %v689_v58 = vmul.f32 %v1590_v55, %v688_v57  ;;  %v686_v59 = vsel %vm685_vm10, %v1588_v3, %v682_v4 }
 0x6f9   :  { %v697_v62 = vmul.f32 %v686_v59, %v663_v33 }
 0x6fa   :  { %v690_v5 = vmul.f32 0.5, %v689_v58 }
 0x6fb   :  { %v702_v8 = vmul.f32 %v1559_v61, %v697_v62 }
 0x6fc   :  { %v691_v60 = vsub.f32 1.5, %v690_v5 }
 0x6fd   :  { %v1995_v12 = vadd.f32 %v1560_v7, %v702_v8 }
 0x6fe   :  { %v692_v63 = vmul.f32 %v1590_v55, %v691_v60 }
 0x700   :  { %v696_v6 = vsel %vm695_vm13, %v1590_v55, %v692_v63 }
 0x701   :  { %v698_v9 = vmul.f32 %v696_v6, %v664_v41 }
 0x703   :  { %v703_v11 = vmul.f32 %v1559_v61, %v698_v9 }
 0x705   :  { %v1997_v14 = vadd.f32 %v1560_v7, %v703_v11 }
 0x707   :  { %v709_v15 = vpack.c.bf16 %v1997_v14, %v1995_v12 }
 0x709   :  { %1388 = vmatmul.msk.bf16.vlgmr.msra.gmra.mxu0 %vm117_vm0, %v709_v15 }
 0x786   :  { %v744_v18 = vpop.f32.mrf.mxu0 }
 0x787   :  { %v745_v19 = vadd.f32 %v1561_v17, %v744_v18 }
 0x789   :  { %v752_v20 = vmul.f32 %v745_v19, %v1799_v10  ;;  %v751_v21 = vmul.f32 %v745_v19, %v1807_v16  ;;  %v750_v23 = vmul.f32 %v745_v19, %v1801_v13  ;;  %v749_v28 = vmul.f32 %v745_v19, %v1819_v22 }
 0x78a   :  { %v753_v33 = vmul.f32 %v745_v19, %v1853_v40  ;;  %v754_v34 = vmul.f32 %v745_v19, %v1851_v39 }
 0x78b   :  { %767 = vrot.lane.b32.xlu0 %v752_v20, %s1668_s20  ;;  %765 = vrot.lane.b32.xlu2 %v751_v21, %s1668_s20  ;;  %v1493_v21 = vld [vmem:[#allocation2 + $0x18] sm:$0xff] }
 0x78c   :  { %763 = vrot.lane.b32.xlu1 %v750_v23, %s1668_s20  ;;  %v1536_v36 = vpack.i.bf16 %v753_v33, %v754_v34  ;;  %v1492_v23 = vld [vmem:[#allocation2 + $0x10] sm:$0xff] }
 0x78e   :  { %v746_v24 = vpop.f32.mrf.mxu0 }
 0x78f   :  { %v2011_v25 = vadd.f32 %v1561_v17, %v746_v24 }
 0x791   :  { %v873_v26 = vmul.f32 %v2011_v25, %v1799_v10  ;;  %v871_v27 = vmul.f32 %v2011_v25, %v1801_v13  ;;  %v872_v29 = vmul.f32 %v2011_v25, %v1807_v16  ;;  %v870_v30 = vmul.f32 %v2011_v25, %v1819_v22 }
 0x792   :  { %v755_v10 = vmul.f32 %v745_v19, %v1842_v35  ;;  %v756_v13 = vmul.f32 %v745_v19, %v1838_v32  ;;  %v876_v16 = vmul.f32 %v2011_v25, %v1842_v35  ;;  %v877_v22 = vmul.f32 %v2011_v25, %v1838_v32 }
 0x793   :  { %888 = vrot.lane.b32.xlu0 %v873_v26, %s1668_s20  ;;  %761 = vrot.lane.b32.xlu2 %v749_v28, %s1668_s20  ;;  %v874_v38 = vmul.f32 %v2011_v25, %v1853_v40  ;;  %v875_v41 = vmul.f32 %v2011_v25, %v1851_v39 }
 0x794   :  { %884 = vrot.lane.b32.xlu1 %v871_v27, %s1668_s20  ;;  %v1531_v31 = vpack.i.bf16 %v755_v10, %v756_v13  ;;  %v1541_v37 = vpack.i.bf16 %v876_v16, %v877_v22  ;;  %v1562_v27 = vld [vmem:[%s2142_s7 + $0x1] ss:$0 sm:$0xff] }
 0x795   :  { %v1546_v42 = vpack.i.bf16 %v874_v38, %v875_v41 }
 0x79b   :  { %886 = vrot.lane.b32.xlu0 %v872_v29, %s1668_s20  ;;  %882 = vrot.lane.b32.xlu2 %v870_v30, %s1668_s20 }
 0x7a3   :  { %1532 = vrot.lane.b32.xlu2 %v1531_v31, %s1664_s29 }
 0x7ab   :  { %1537 = vrot.lane.b32.xlu2 %v1536_v36, %s1664_s29 }
 0x7b3   :  { %1542 = vrot.lane.b32.xlu2 %v1541_v37, %s1664_s29 }
 0x7bb   :  { %1547 = vrot.lane.b32.xlu2 %v1546_v42, %s1664_s29 }
 0x7e5   :  { %v766_v43 = vpop.permute.xlu2 %765 }
 0x7ed   :  { %v762_v44 = vpop.permute.xlu2 %761 }
 0x7f5   :  { %v883_v45 = vpop.permute.xlu2 %882 }
 0x7fd   :  { %v768_v46 = vpop.permute.xlu0 %767  ;;  %v1533_v35 = vpop.permute.xlu2 %1532 }
 0x7fe   :  { %v1534_v47 = vunpack.i.l.bf16 %v1533_v35  ;;  %1389 = vmatpush.xpose.msk.msra.mxu1 %vm117_vm0, %v768_v46  ;;  %v1535_v32 = vunpack.i.h.bf16 %v1533_v35  ;;  %v764_v40 = vpop.permute.xlu1 %763 }
 0x800   :  { %862 = vmatpush.msrb.mxu0 %v1534_v47  ;;  %v1494_v47 = vld [vmem:[#allocation4 + $0x10] sm:$0xff] }
 0x802   :  { %1390 = vmatpush.xpose.msk.msra.mxu1 %vm117_vm0, %v766_v43  ;;  %863 = vmatpush.msrb.mxu0 %v1535_v32 }
 0x805   :  { %v889_v0 = vpop.permute.xlu0 %888  ;;  %v1538_v1 = vpop.permute.xlu2 %1537 }
 0x806   :  { %v1539_v39 = vunpack.i.l.bf16 %v1538_v1  ;;  %1391 = vmatpush.xpose.msk.msra.mxu1 %vm117_vm0, %v764_v40  ;;  %v1540_v2 = vunpack.i.h.bf16 %v1538_v1  ;;  %v885_v52 = vpop.permute.xlu1 %884 }
 0x808   :  { %864 = vmatpush.msrb.mxu0 %v1539_v39 }
 0x80a   :  { %1392 = vmatpush.xpose.msk.msra.mxu1 %vm117_vm0, %v762_v44  ;;  %865 = vmatpush.msrb.mxu0 %v1540_v2 }
 0x80d   :  { %v887_v3 = vpop.permute.xlu0 %886  ;;  %1393 = vmatmul.msk.f32.vlgmr.msra.gmra.mxu1 %vm117_vm0, %v745_v19  ;;  %v1543_v48 = vpop.permute.xlu2 %1542 }
 0x80e   :  { %1396 = vmatpush.xpose.msk.msrb.mxu1 %vm117_vm0, %v889_v0  ;;  %v1544_v49 = vunpack.i.l.bf16 %v1543_v48  ;;  %v1545_v51 = vunpack.i.h.bf16 %v1543_v48 }
 0x810   :  { %983 = vmatpush.msra.mxu0 %v1544_v49 }
 0x812   :  { %1397 = vmatpush.xpose.msk.msrb.mxu1 %vm117_vm0, %v887_v3  ;;  %984 = vmatpush.msra.mxu0 %v1545_v51 }
 0x815   :  { %v1548_v53 = vpop.permute.xlu2 %1547 }
 0x816   :  { %1398 = vmatpush.xpose.msk.msrb.mxu1 %vm117_vm0, %v885_v52  ;;  %v1549_v55 = vunpack.i.l.bf16 %v1548_v53  ;;  %v1550_v4 = vunpack.i.h.bf16 %v1548_v53 }
 0x818   :  { %985 = vmatpush.msra.mxu0 %v1549_v55 }
 0x81a   :  { %1399 = vmatpush.xpose.msk.msrb.mxu1 %vm117_vm0, %v883_v45  ;;  %986 = vmatpush.msra.mxu0 %v1550_v4 }
 0x81d   :  { %1400 = vmatmul.msk.f32.vlgmr.msrb.gmra.mxu1 %vm117_vm0, %v2011_v25 }
 0x88a   :  { %v797_v57 = vpop.f32.mrf.mxu1 }
 0x88b   :  { %v798_v58 = vadd.f32 %v1861_v50, %v797_v57 }
 0x88d   :  { %v800_v59 = vsel %vm117_vm0, %v798_v58, -inf }
 0x88e   :  { %801 = vmax.xlane.f32.xlu0 %v800_v59 }
 0x89a   :  { %v918_v5 = vpop.f32.mrf.mxu1 }
 0x89b   :  { %v919_v60 = vadd.f32 %v1868_v54, %v918_v5 }
 0x89d   :  { %v921_v61 = vsel %vm117_vm0, %v919_v60, -inf }
 0x89e   :  { %922 = vmax.xlane.f32.xlu1 %v921_v61  ;;  %v1564_v61 = vld [vmem:[%s2144_s9 + $0x1] ss:$0 sm:$0xff] }
 0x901   :  { %v802_v62 = vpop.xlane.xlu0 %801 }
 0x902   :  { %v803_v63 = vsub.f32 %v798_v58, %v802_v62  ;;  %v1563_v58 = vld [vmem:[%s2143_s8 + $0x1] ss:$0 sm:$0xff] }
 0x904   :  { %v804_v6 = vmul.f32 1.442695, %v803_v63 }
 0x906   :  { %1591 = vpow2.f32 %v804_v6 }
 0x90c   :  { %v1592_v7 = vpop.eup %1591 }
 0x90d   :  { %1394 = vmatmul.msk.f32.vlgmr.msrb.gmra.mxu2 %vm117_vm0, %v1592_v7 }
 0x90e   :  { %1023 = vmatpush.bf16.msrb.mxu2 %v1493_v21  ;;  %v1565_v21 = vld [vmem:[%s2146_s11 + $0x1] ss:$0 sm:$0xff] }
 0x911   :  { %v923_v8 = vpop.xlane.xlu1 %922 }
 0x912   :  { %v924_v9 = vsub.f32 %v919_v60, %v923_v8  ;;  %1024 = vmatpush.bf16.msrb.mxu2 %v1492_v23 }
 0x914   :  { %v925_v11 = vmul.f32 1.442695, %v924_v9 }
 0x916   :  { %1593 = vpow2.f32 %v925_v11  ;;  %v1503_v11 = vld [vmem:[%s2147_s12 + $0x78] sm:$0xff] }
 0x917   :  { %1220 = vmatpush.bf16.msrb.mxu3 %v1503_v11 }
 0x91c   :  { %v1594_v50 = vpop.eup %1593 }
 0x91d   :  { %1401 = vmatmul.msk.f32.vlgmr.msra.gmra.mxu2 %vm117_vm0, %v1594_v50 }
 0x990   :  { %v826_v15 = vpop.f32.mrf.mxu2 }
 0x991   :  { %1595 = vrcp.f32 %v826_v15  ;;  %v1501_v15 = vld [vmem:[%s2147_s12 + $0x68] sm:$0xff] }
 0x997   :  { %v1596_v54 = vpop.eup %1595 }
 0x998   :  { %v830_v17 = vmul.f32 %v1596_v54, %v1592_v7  ;;  %v1500_v54 = vld [vmem:[%s2147_s12 + $0x60] sm:$0xff] }
 0x99a   :  { %1395 = vmatmul.msk.f32.vlgmr.msrb.gmra.mxu0 %vm117_vm0, %v830_v17  ;;  %v1499_v17 = vld [vmem:[%s2147_s12 + $0x58] sm:$0xff] }
 0x9a0   :  { %v947_v18 = vpop.f32.mrf.mxu2 }
 0x9a1   :  { %1597 = vrcp.f32 %v947_v18  ;;  %v1498_v18 = vld [vmem:[%s2147_s12 + $0x50] sm:$0xff] }
 0x9a7   :  { %v1598_v19 = vpop.eup %1597 }
 0x9a8   :  { %v951_v20 = vmul.f32 %v1598_v19, %v1594_v50  ;;  %v1502_v50 = vld [vmem:[%s2147_s12 + $0x70] sm:$0xff]  ;;  %v1497_v19 = vld [vmem:[%s2147_s12 + $0x48] sm:$0xff] }
 0x9a9   :  { %1221 = vmatpush.bf16.msrb.mxu3 %v1502_v50 }
 0x9aa   :  { %1402 = vmatmul.msk.f32.vlgmr.msra.gmra.mxu0 %vm117_vm0, %v951_v20  ;;  %v1496_v20 = vld [vmem:[%s2147_s12 + $0x40] sm:$0xff] }
 0x9ad   :  { %1222 = vmatpush.bf16.msrb.mxu3 %v1501_v15  ;;  %v1567_v15 = vld [vmem:[%s2149_s14 + $0x1] ss:$0 sm:$0xff] }
 0x9b1   :  { %1223 = vmatpush.bf16.msrb.mxu3 %v1500_v54 }
 0x9b5   :  { %1224 = vmatpush.bf16.msrb.mxu3 %v1499_v17 }
 0x9b9   :  { %1225 = vmatpush.bf16.msrb.mxu3 %v1498_v18 }
 0x9bd   :  { %1226 = vmatpush.bf16.msrb.mxu3 %v1497_v19 }
 0x9c1   :  { %1227 = vmatpush.bf16.msrb.mxu3 %v1496_v20 }
 0xa17   :  { %v867_v24 = vpop.f32.mrf.mxu0 }
 0xa27   :  { %v988_v25 = vpop.f32.mrf.mxu0 }
 0xa28   :  { %v991_v26 = vpack.c.bf16 %v988_v25, %v867_v24 }
 0xa2a   :  { %1412 = vmatmul.msk.bf16.vlgmr.msrb.gmra.mxu2 %vm117_vm0, %v991_v26 }
 0xaad   :  { %v1026_v28 = vpop.f32.mrf.mxu2 }
 0xaae   :  { %v1027_v29 = vadd.f32 %v1562_v27, %v1026_v28 }
 0xab0   :  { %v1031_v30 = vadd.f32 %v1027_v29, %v1995_v12 }
 0xab2   :  { %v1037_v10 = vsel %vm117_vm0, %v1031_v30, 0.0 }
 0xab3   :  { %1038 = vadd.xlane.f32.xlu2 %v1037_v10 }
 0xab5   :  { %v1028_v13 = vpop.f32.mrf.mxu2 }
 0xab6   :  { %v1029_v31 = vadd.f32 %v1562_v27, %v1028_v13 }
 0xab8   :  { %v1032_v33 = vadd.f32 %v1029_v31, %v1997_v14  ;;  %v1495_v14 = vld [vmem:[#allocation4 + $0x18] sm:$0xff] }
 0xab9   :  { %1123 = vmatpush.bf16.msrb.mxu0 %v1495_v14  ;;  %v1566_v14 = vld [vmem:[%s2148_s13 + $0x1] ss:$0 sm:$0xff] }
 0xaba   :  { %v1040_v34 = vsel %vm117_vm0, %v1032_v33, 0.0 }
 0xabb   :  { %1041 = vadd.xlane.f32.xlu0 %v1040_v34 }
 0xabd   :  { %1124 = vmatpush.bf16.msrb.mxu0 %v1494_v47 }
 0xb26   :  { %v1039_v36 = vpop.xlane.xlu2 %1038 }
 0xb27   :  { %v1043_v16 = vmul.f32 %v1039_v36, %v1922_v56 }
 0xb29   :  { %v1045_v22 = vsub.f32 %v1031_v30, %v1043_v16 }
 0xb2b   :  { %v1047_v37 = vmul.f32 %v1045_v22, %v1045_v22 }
 0xb2d   :  { %v1049_v38 = vsel %vm117_vm0, %v1047_v37, 0.0 }
 0xb2e   :  { %v1042_v41 = vpop.xlane.xlu0 %1041  ;;  %1050 = vadd.xlane.f32.xlu1 %v1049_v38 }
 0xb2f   :  { %v1044_v12 = vmul.f32 %v1042_v41, %v1922_v56 }
 0xb31   :  { %v1046_v42 = vsub.f32 %v1032_v33, %v1044_v12 }
 0xb33   :  { %v1048_v43 = vmul.f32 %v1046_v42, %v1046_v42 }
 0xb35   :  { %v1052_v44 = vsel %vm117_vm0, %v1048_v43, 0.0 }
 0xb36   :  { %1053 = vadd.xlane.f32.xlu0 %v1052_v44 }
 0xba1   :  { %v1051_v45 = vpop.xlane.xlu1 %1050 }
 0xba2   :  { %v1055_v46 = vmul.f32 %v1051_v45, %v1922_v56 }
 0xba4   :  { %v1057_v35 = vadd.f32 1e-12, %v1055_v46 }
 0xba6   :  { %1599 = vrsqrt.f32 %v1057_v35  ;;  %vm1065_vm15 = vweird.f32 %v1057_v35 }
 0xba9   :  { %v1054_v32 = vpop.xlane.xlu0 %1053 }
 0xbaa   :  { %v1056_v40 = vmul.f32 %v1054_v32, %v1922_v56 }
 0xbac   :  { %v1600_v0 = vpop.eup %1599  ;;  %v1058_v1 = vadd.f32 1e-12, %v1056_v40 }
 0xbad   :  { %v1060_v39 = vmul.f32 %v1600_v0, %v1057_v35  ;;  %vm1066_vm14 = vweird.f32 %v1600_v0 }
 0xbae   :  { %1601 = vrsqrt.f32 %v1058_v1  ;;  %vm1067_vm1 = vmor %vm1065_vm15, %vm1066_vm14  ;;  %vm1075_vm3 = vweird.f32 %v1058_v1 }
 0xbaf   :  { %v1061_v2 = vmul.f32 %v1600_v0, %v1060_v39 }
 0xbb1   :  { %v1062_v3 = vmul.f32 0.5, %v1061_v2 }
 0xbb3   :  { %v1063_v48 = vsub.f32 1.5, %v1062_v3 }
 0xbb4   :  { %v1602_v49 = vpop.eup %1601 }
 0xbb5   :  { %v1064_v51 = vmul.f32 %v1600_v0, %v1063_v48  ;;  %v1070_v52 = vmul.f32 %v1602_v49, %v1058_v1  ;;  %vm1076_vm2 = vweird.f32 %v1602_v49 }
 0xbb6   :  { %vm1077_vm4 = vmor %vm1075_vm3, %vm1076_vm2 }
 0xbb7   :  { %v1071_v53 = vmul.f32 %v1602_v49, %v1070_v52  ;;  %v1068_v55 = vsel %vm1067_vm1, %v1600_v0, %v1064_v51 }
 0xbb8   :  { %v1079_v59 = vmul.f32 %v1068_v55, %v1045_v22 }
 0xbb9   :  { %v1072_v4 = vmul.f32 0.5, %v1071_v53 }
 0xbba   :  { %v1084_v62 = vmul.f32 %v1563_v58, %v1079_v59 }
 0xbbb   :  { %v1073_v57 = vsub.f32 1.5, %v1072_v4 }
 0xbbc   :  { %v1089_v7 = vadd.f32 %v1564_v61, %v1084_v62 }
 0xbbd   :  { %v1074_v5 = vmul.f32 %v1602_v49, %v1073_v57 }
 0xbbf   :  { %v1078_v60 = vsel %vm1077_vm4, %v1602_v49, %v1074_v5 }
 0xbc0   :  { %v1080_v63 = vmul.f32 %v1078_v60, %v1046_v42 }
 0xbc2   :  { %v1085_v6 = vmul.f32 %v1563_v58, %v1080_v63 }
 0xbc4   :  { %v1090_v8 = vadd.f32 %v1564_v61, %v1085_v6 }
 0xbc6   :  { %v1091_v9 = vpack.c.bf16 %v1090_v8, %v1089_v7 }
 0xbc8   :  { %1424 = vmatmul.msk.bf16.vlgmr.msrb.gmra.mxu0 %vm117_vm0, %v1091_v9 }
 0xc45   :  { %v1126_v23 = vpop.f32.mrf.mxu0 }
 0xc46   :  { %v1127_v24 = vadd.f32 %v1565_v21, %v1126_v23 }
 0xc48   :  { %v1133_v25 = vmul.f32 0.044715, %v1127_v24  ;;  %v1131_v38 = vmul.f32 0.5, %v1127_v24 }
 0xc4a   :  { %v1135_v26 = vmul.f32 %v1133_v25, %v1127_v24 }
 0xc4c   :  { %v1137_v27 = vmul.f32 %v1135_v26, %v1127_v24 }
 0xc4d   :  { %v1128_v28 = vpop.f32.mrf.mxu0 }
 0xc4e   :  { %v1129_v29 = vadd.f32 %v1565_v21, %v1128_v28  ;;  %v1139_v30 = vadd.f32 %v1137_v27, %v1127_v24 }
 0xc50   :  { %v1134_v10 = vmul.f32 0.044715, %v1129_v29  ;;  %v1141_v31 = vmul.f32 0.7978846, %v1139_v30  ;;  %v1132_v41 = vmul.f32 0.5, %v1129_v29 }
 0xc52   :  { %v1136_v13 = vmul.f32 %v1134_v10, %v1129_v29  ;;  %1603 = vtanh.f32 %v1141_v31 }
 0xc54   :  { %v1138_v33 = vmul.f32 %v1136_v13, %v1129_v29 }
 0xc56   :  { %v1140_v34 = vadd.f32 %v1138_v33, %v1129_v29 }
 0xc58   :  { %v1142_v36 = vmul.f32 0.7978846, %v1140_v34  ;;  %v1604_v16 = vpop.eup %1603 }
 0xc59   :  { %v1145_v22 = vadd.f32 1.0, %v1604_v16 }
 0xc5a   :  { %1605 = vtanh.f32 %v1142_v36 }
 0xc5b   :  { %v1147_v42 = vmul.f32 %v1145_v22, %v1131_v38 }
 0xc60   :  { %v1606_v37 = vpop.eup %1605 }
 0xc61   :  { %v1146_v12 = vadd.f32 1.0, %v1606_v37 }
 0xc63   :  { %v1148_v43 = vmul.f32 %v1146_v12, %v1132_v41 }
 0xc65   :  { %v1149_v44 = vpack.c.bf16 %v1148_v43, %v1147_v42 }
 0xc67   :  { %1228 = vmatmul.bf16.vlgmr.msrb.gmra.mxu3 %v1149_v44 }
 0xcea   :  { %v1229_v45 = vpop.f32.mrf.mxu3 }
 0xceb   :  { %v1230_v46 = vadd.f32 %v1566_v14, %v1229_v45 }
 0xced   :  { %v1234_v35 = vadd.f32 %v1230_v46, %v1089_v7 }
 0xcef   :  { %v1240_v47 = vsel %vm117_vm0, %v1234_v35, 0.0 }
 0xcf0   :  { %1241 = vadd.xlane.f32.xlu1 %v1240_v47 }
 0xcf2   :  { %v1231_v32 = vpop.f32.mrf.mxu3 }
 0xcf3   :  { %v1232_v40 = vadd.f32 %v1566_v14, %v1231_v32 }
 0xcf5   :  { %v1235_v0 = vadd.f32 %v1232_v40, %v1090_v8 }
 0xcf7   :  { %v1243_v1 = vsel %vm117_vm0, %v1235_v0, 0.0 }
 0xcf8   :  { %1244 = vadd.xlane.f32.xlu0 %v1243_v1 }
 0xd63   :  { %v1242_v39 = vpop.xlane.xlu1 %1241 }
 0xd64   :  { %v1246_v2 = vmul.f32 %v1242_v39, %v1922_v56 }
 0xd66   :  { %v1248_v3 = vsub.f32 %v1234_v35, %v1246_v2 }
 0xd68   :  { %v1250_v48 = vmul.f32 %v1248_v3, %v1248_v3 }
 0xd6a   :  { %v1252_v49 = vsel %vm117_vm0, %v1250_v48, 0.0 }
 0xd6b   :  { %v1245_v51 = vpop.xlane.xlu0 %1244  ;;  %1253 = vadd.xlane.f32.xlu1 %v1252_v49 }
 0xd6c   :  { %v1247_v52 = vmul.f32 %v1245_v51, %v1922_v56 }
 0xd6e   :  { %v1249_v53 = vsub.f32 %v1235_v0, %v1247_v52 }
 0xd70   :  { %v1251_v55 = vmul.f32 %v1249_v53, %v1249_v53 }
 0xd72   :  { %v1255_v4 = vsel %vm117_vm0, %v1251_v55, 0.0 }
 0xd73   :  { %1256 = vadd.xlane.f32.xlu0 %v1255_v4 }
 0xdde   :  { %v1254_v57 = vpop.xlane.xlu1 %1253 }
 0xddf   :  { %v1258_v58 = vmul.f32 %v1254_v57, %v1922_v56 }
 0xde1   :  { %v1260_v59 = vadd.f32 1e-12, %v1258_v58 }
 0xde3   :  { %1607 = vrsqrt.f32 %v1260_v59  ;;  %vm1268_vm6 = vweird.f32 %v1260_v59 }
 0xde6   :  { %v1257_v5 = vpop.xlane.xlu0 %1256 }
 0xde7   :  { %v1259_v60 = vmul.f32 %v1257_v5, %v1922_v56  ;;  %v1568_v56 = vld [vmem:[%s2150_s15 + $0x1] ss:$0 sm:$0xff] }
 0xde9   :  { %v1608_v61 = vpop.eup %1607  ;;  %v1261_v62 = vadd.f32 1e-12, %v1259_v60 }
 0xdea   :  { %v1263_v63 = vmul.f32 %v1608_v61, %v1260_v59  ;;  %vm1269_vm5 = vweird.f32 %v1608_v61 }
 0xdeb   :  { %1609 = vrsqrt.f32 %v1261_v62  ;;  %vm1270_vm7 = vmor %vm1268_vm6, %vm1269_vm5  ;;  %vm1278_vm9 = vweird.f32 %v1261_v62 }
 0xdec   :  { %v1264_v6 = vmul.f32 %v1608_v61, %v1263_v63 }
 0xdee   :  { %v1265_v7 = vmul.f32 0.5, %v1264_v6 }
 0xdf0   :  { %v1266_v8 = vsub.f32 1.5, %v1265_v7 }
 0xdf1   :  { %v1610_v9 = vpop.eup %1609 }
 0xdf2   :  { %v1267_v11 = vmul.f32 %v1608_v61, %v1266_v8  ;;  %v1273_v50 = vmul.f32 %v1610_v9, %v1261_v62  ;;  %vm1279_vm8 = vweird.f32 %v1610_v9 }
 0xdf3   :  { %vm1280_vm10 = vmor %vm1278_vm9, %vm1279_vm8 }
 0xdf4   :  { %v1271_v54 = vsel %vm1270_vm7, %v1608_v61, %v1267_v11  ;;  %v1274_v17 = vmul.f32 %v1610_v9, %v1273_v50 }
 0xdf5   :  { %v1282_v18 = vmul.f32 %v1271_v54, %v1248_v3 }
 0xdf6   :  { %v1275_v19 = vmul.f32 0.5, %v1274_v17 }
 0xdf7   :  { %v1287_v20 = vmul.f32 %v1567_v15, %v1282_v18 }
 0xdf8   :  { %v1276_v21 = vsub.f32 1.5, %v1275_v19 }
 0xdf9   :  { %v1292_v23 = vadd.f32 %v1568_v56, %v1287_v20 }
 0xdfa   :  { %v1277_v24 = vmul.f32 %v1610_v9, %v1276_v21 }
 0xdfb   :  { %1294 = vst.msk [vmem:[%s2151_s16] sm:$0xff] %vm117_vm0, %v1292_v23 }
 0xdfc   :  { %v1281_v25 = vsel %vm1280_vm10, %v1610_v9, %v1277_v24 }
 0xdfd   :  { %v1283_v26 = vmul.f32 %v1281_v25, %v1249_v53 }
 0xdff   :  { %v1288_v27 = vmul.f32 %v1567_v15, %v1283_v26 }
 0xe01   :  { %v1293_v28 = vadd.f32 %v1568_v56, %v1288_v27 }
 0xe03   :  { %1295 = vst.msk [vmem:[%s2151_s16 + $0x8] sm:$0xff] %vm117_vm0, %v1293_v28 }
 0xe04   :  { %1300 = vsyncpa [#allocation3], 1 }
 0xe05   :  { %1301 = vsyncpa [#allocation5], 1 }

</bundles_post_ra>
